<compile_context>
chip_gen: v6e
topology: v6e:2x2x1
jax: 0.10.0
libtpu: 0.0.40
codegen_flags: <defaults>
</compile_context>

<pallas_src>
import functools

import jax
import jax.numpy as jnp
from jax.experimental import pallas as pl
from jax.experimental.pallas import tpu as pltpu

W0_SIREN = 30.0  # Sine activation frequency (inr.Siren default w0=30.0)


def _round_up(x, m):
    return ((x + m - 1) // m) * m


def _probe_kernel(xT_ref, w0_ref, b0_ref, w1t_ref, b1_ref, w2t_ref, b2_ref, out_ref,
                  *, h0, h1, h2, h0_pad, h1_pad, h2_pad):
    # xT_ref : (d_in, N_pad)         shared probe points, nodes lane-dense (multiple of 128)
    # w0_ref : (Bt*h0, d_in)         layer-0 weights, pre-flattened (one 2-D matmul)
    # b0_ref : (Bt*h0, 1)
    # w1t_ref: (Bt, h1, h0)          transposed per-sample weights
    # w2t_ref: (Bt, h2, h1)
    # b1/b2  : (Bt, h*, 1)
    # out_ref: (Bt, h0_pad+h1_pad+h2_pad, N_pad)   internal layout [z0 | z1 | z2+pad]
    bt = out_ref.shape[0]
    n = xT_ref.shape[1]

    def pad_rows(a, rows):
        # Pad the sublane (row) axis with zeros so every store is a full 8-row tile.
        if a.shape[1] == rows:
            return a
        z = jnp.zeros((a.shape[0], rows - a.shape[1], a.shape[2]), a.dtype)
        return jnp.concatenate([a, z], axis=1)

    # Layer 0: ONE flattened matmul (Bt*h0, d_in) @ (d_in, N_pad) -> (Bt*h0, N_pad).
    pre0 = jnp.dot(w0_ref[...], xT_ref[...],
                   preferred_element_type=jnp.float32) + b0_ref[...]
    z0 = jnp.sin(W0_SIREN * pre0).reshape(bt, h0, n)                 # (Bt, h0, N_pad)

    # Layer 1: per-sample matmul in (rows, nodes) layout.
    pre1 = jnp.einsum("bkh,bhn->bkn", w1t_ref[...], z0,
                      preferred_element_type=jnp.float32) + b1_ref[...]
    z1 = jnp.sin(W0_SIREN * pre1)                                    # (Bt, h1, N_pad)

    # Layer 2 (output layer, no sine, +0.5).
    z2 = jnp.einsum("bok,bkn->bon", w2t_ref[...], z1,
                    preferred_element_type=jnp.float32) + b2_ref[...] + 0.5

    # All three stores start on an 8-sublane boundary and span whole (8,128) tiles.
    out_ref[:, 0:h0_pad, :] = pad_rows(z0, h0_pad)
    out_ref[:, h0_pad:h0_pad + h1_pad, :] = pad_rows(z1, h1_pad)
    out_ref[:, h0_pad + h1_pad:, :] = pad_rows(z2, h2_pad)


def _pick_batch_tile(B, rows_pad, n_pad):
    """Batch samples per grid step: amortize ~0.35us/step overhead (~>=1MB of output
    per step), cap at 32, and keep >= 2 grid steps when B > 2 (v7x megacore)."""
    if B <= 2:
        return 1
    bytes_per_sample = rows_pad * n_pad * 4
    target = max(1, (1 << 20) // max(bytes_per_sample, 1))
    return max(1, min(32, target, B // 2))


def graph_probe_features_forward(weights, biases, inputs, *, batch_tile=None):
    """weights[l]: (B, in_l, out_l, 1), biases[l]: (B, out_l, 1), inputs: (1, N, d_in).

    Returns (B, d_in + h0 + h1 + out_channels, N), matching
    torch.cat(out, dim=-1).permute(0, 2, 1) of the reference module (proj_dim=None).
    """
    W0, W1, W2 = (w[..., 0] for w in weights)          # (B, in_l, out_l)
    b0, b1, b2 = biases                                # (B, out_l, 1) storage layout
    B, d_in, h0 = W0.shape
    h1 = W1.shape[2]
    h2 = W2.shape[2]
    N = inputs.shape[1]

    # Padded internal layout: lane-dense nodes, 8-aligned row segments.
    n_pad = _round_up(N, 128)
    h0_pad = _round_up(h0, 8)
    h1_pad = _round_up(h1, 8)
    h2_pad = _round_up(h2, 8)
    rows_pad = h0_pad + h1_pad + h2_pad

    Bt = batch_tile if batch_tile is not None else _pick_batch_tile(B, rows_pad, n_pad)
    B_pad = pl.cdiv(B, Bt) * Bt

    # Weights transposed so activations come out directly in (rows, nodes) layout.
    w0t = jnp.transpose(W0, (0, 2, 1)).astype(jnp.float32)   # (B, h0, d_in)
    w1t = jnp.transpose(W1, (0, 2, 1)).astype(jnp.float32)   # (B, h1, h0)
    w2t = jnp.transpose(W2, (0, 2, 1)).astype(jnp.float32)   # (B, h2, h1)
    b0f = b0.astype(jnp.float32)
    b1f = b1.astype(jnp.float32)
    b2f = b2.astype(jnp.float32)

    xT = jnp.transpose(inputs[0].astype(jnp.float32), (1, 0))        # (d_in, N)
    xT_pad = jnp.pad(xT, ((0, 0), (0, n_pad - N))) if n_pad != N else xT

    if B_pad != B:
        def _pad_b(a):
            return jnp.pad(a, [(0, B_pad - B)] + [(0, 0)] * (a.ndim - 1))
        w0t, w1t, w2t, b0f, b1f, b2f = map(_pad_b, (w0t, w1t, w2t, b0f, b1f, b2f))

    # Flatten layer 0 so the kernel runs a single 2-D matmul per grid step.
    w0_flat = w0t.reshape(B_pad * h0, d_in)
    b0_flat = b0f.reshape(B_pad * h0, 1)

    flops = 2 * B_pad * n_pad * (d_in * h0 + h0 * h1 + h1 * h2)
    transcendentals = B_pad * n_pad * (h0 + h1)
    bytes_accessed = 4 * (
        B_pad * (d_in * h0 + h0 * h1 + h1 * h2 + h0 + h1 + h2)   # params
        + B_pad * rows_pad * n_pad                                # padded output
        + d_in * n_pad)                                           # probe points
    cost = pl.CostEstimate(flops=flops, transcendentals=transcendentals,
                           bytes_accessed=bytes_accessed)

    grid_spec = pltpu.PrefetchScalarGridSpec(
        num_scalar_prefetch=0,
        grid=(B_pad // Bt,),                               # Bt INRs per grid step
        in_specs=[
            pl.BlockSpec((d_in, n_pad), lambda g: (0, 0)),          # shared probe points
            pl.BlockSpec((Bt * h0, d_in), lambda g: (g, 0)),        # layer-0 W, flattened
            pl.BlockSpec((Bt * h0, 1), lambda g: (g, 0)),           # layer-0 b, flattened
            pl.BlockSpec((Bt, h1, h0), lambda g: (g, 0, 0)),
            pl.BlockSpec((Bt, h1, 1), lambda g: (g, 0, 0)),
            pl.BlockSpec((Bt, h2, h1), lambda g: (g, 0, 0)),
            pl.BlockSpec((Bt, h2, 1), lambda g: (g, 0, 0)),
        ],
        out_specs=pl.BlockSpec((Bt, rows_pad, n_pad), lambda g: (g, 0, 0)),
    )

    core = pl.pallas_call(
        functools.partial(_probe_kernel, h0=h0, h1=h1, h2=h2,
                          h0_pad=h0_pad, h1_pad=h1_pad, h2_pad=h2_pad),
        out_shape=jax.ShapeDtypeStruct((B_pad, rows_pad, n_pad), jnp.float32),
        grid_spec=grid_spec,
        # TODO(synk): on v7x verify both TensorCores are used; if not, switch the batch
        # axis to pltpu.CORE_PARALLEL (no effect on single-TC v5e/v6e).
        compiler_params=pltpu.CompilerParams(dimension_semantics=("parallel",)),
        cost_estimate=cost,
    )(xT_pad, w0_flat, b0_flat, w1t, b1f, w2t, b2f)

    # Wrapper-side layout plumbing: restore [x, z0, z1, z2] row order, drop row/lane pads
    # and padded batch rows (one fused XLA pass over a small output).
    x_rows = jnp.broadcast_to(xT[None], (B, d_in, N))
    out = jnp.concatenate(
        [x_rows,
         core[:B, 0:h0, :N],
         core[:B, h0_pad:h0_pad + h1, :N],
         core[:B, h0_pad + h1_pad:h0_pad + h1_pad + h2, :N]],
        axis=1)

    # TODO(synk): proj_dim branch (per-layer Linear(num_inputs->proj_dim)+LayerNorm) not implemented.
    return out


def _reference(weights, biases, inputs):
    """Pure-JAX reference of the same forward, for correctness checking."""
    W0, W1, W2 = (w[..., 0] for w in weights)
    b0, b1, b2 = (b[..., 0] for b in biases)
    B = W0.shape[0]
    x = jnp.broadcast_to(inputs, (B,) + inputs.shape[1:])     # (B, N, d_in)
    z0 = jnp.sin(W0_SIREN * (jnp.einsum("bnd,bdh->bnh", x, W0) + b0[:, None]))
    z1 = jnp.sin(W0_SIREN * (jnp.einsum("bnh,bhk->bnk", z0, W1) + b1[:, None]))
    z2 = jnp.einsum("bnk,bko->bno", z1, W2) + b2[:, None] + 0.5
    out = jnp.concatenate([x, z0, z1, z2], axis=-1)
    return jnp.transpose(out, (0, 2, 1))


def _make_problem(key, B, d_in, h, inr_d_out, num_inputs):
    k = jax.random.split(key, 7)
    inputs = 2.0 * jax.random.uniform(k[0], (1, num_inputs, d_in), jnp.float32) - 1.0
    weights = [
        0.5 * jax.random.normal(k[1], (B, d_in, h, 1), jnp.float32),
        0.2 * jax.random.normal(k[2], (B, h, h, 1), jnp.float32),
        0.2 * jax.random.normal(k[3], (B, h, inr_d_out, 1), jnp.float32),
    ]
    biases = [
        0.1 * jax.random.normal(k[4], (B, h, 1), jnp.float32),
        0.1 * jax.random.normal(k[5], (B, h, 1), jnp.float32),
        0.1 * jax.random.normal(k[6], (B, inr_d_out, 1), jnp.float32),
    ]
    return weights, biases, inputs


if __name__ == "__main__":
    # Module config: d_in=2 -> up_scale=16 -> hidden = 16*2 = 32, n_layers=3.
    B, d_in, up_scale, inr_d_out, num_inputs = 2, 2, 16, 1, 64
    h = up_scale * d_in  # 32

    # sin(30*x) amplifies fp32 accumulation-order differences (MXU vs XLA einsum)
    # by ~30x per layer, so compare at 1e-3 rather than 1e-5.
    RTOL = ATOL = 1e-3

    key = jax.random.PRNGKey(0)
    weights, biases, inputs = _make_problem(key, B, d_in, h, inr_d_out, num_inputs)

    out = graph_probe_features_forward(weights, biases, inputs)
    out = jax.block_until_ready(out)
    ref = _reference(weights, biases, inputs)
    assert out.shape == (B, d_in + h + h + inr_d_out, num_inputs), out.shape
    assert jnp.allclose(out, ref, rtol=RTOL, atol=ATOL), float(jnp.max(jnp.abs(out - ref)))

    # Exercise the multi-sample-per-step path (Bt > 1) and batch padding (B % Bt != 0).
    B2 = 5
    weights2, biases2, inputs2 = _make_problem(jax.random.PRNGKey(1), B2, d_in, h,
                                               inr_d_out, num_inputs)
    out2 = graph_probe_features_forward(weights2, biases2, inputs2, batch_tile=2)
    out2 = jax.block_until_ready(out2)
    ref2 = _reference(weights2, biases2, inputs2)
    assert out2.shape == (B2, d_in + h + h + inr_d_out, num_inputs), out2.shape
    assert jnp.allclose(out2, ref2, rtol=RTOL, atol=ATOL), float(jnp.max(jnp.abs(out2 - ref2)))

    print("KERNEL_OK")
</pallas_src>

<mosaic_0001>
module attributes {stable_mosaic.version = 11 : i64} {
  func.func @_probe_kernel(%arg0: i32, %arg1: memref<2x128xf32, #tpu.memory_space<vmem>>, %arg2: memref<32x2xf32, #tpu.memory_space<vmem>>, %arg3: memref<32x1xf32, #tpu.memory_space<vmem>>, %arg4: memref<1x32x32xf32, #tpu.memory_space<vmem>>, %arg5: memref<1x32x1xf32, #tpu.memory_space<vmem>>, %arg6: memref<1x1x32xf32, #tpu.memory_space<vmem>>, %arg7: memref<1x1x1xf32, #tpu.memory_space<vmem>>, %arg8: memref<1x72x128xf32, #tpu.memory_space<vmem>>) attributes {dimension_semantics = [#tpu.dimension_semantics<parallel>], iteration_bounds = array<i64: 2>, scalar_prefetch = 0 : i64, scratch_operands = 0 : i64, tpu.core_type = #tpu.core_type<tc>, window_params = [{pipeline_mode = #tpu.pipeline_mode<synchronous>, transform_indices = @transform_0, window_bounds = array<i64: 2, 128>}, {transform_indices = @transform_1, window_bounds = array<i64: 32, 2>}, {transform_indices = @transform_2, window_bounds = array<i64: 32, 1>}, {transform_indices = @transform_3, window_bounds = array<i64: 1, 32, 32>}, {transform_indices = @transform_4, window_bounds = array<i64: 1, 32, 1>}, {transform_indices = @transform_5, window_bounds = array<i64: 1, 1, 32>}, {transform_indices = @transform_6, window_bounds = array<i64: 1, 1, 1>}, {transform_indices = @transform_7, window_bounds = array<i64: 1, 72, 128>}]} {
    %c0 = arith.constant 0 : index
    %c0_0 = arith.constant 0 : index
    %0 = vector.load %arg2[%c0, %c0_0] : memref<32x2xf32, #tpu.memory_space<vmem>>, vector<32x2xf32>
    %c0_1 = arith.constant 0 : index
    %c0_2 = arith.constant 0 : index
    %1 = vector.load %arg1[%c0_1, %c0_2] : memref<2x128xf32, #tpu.memory_space<vmem>>, vector<2x128xf32>
    %cst = arith.constant dense<0.000000e+00> : vector<32x128xf32>
    %2 = tpu.matmul %0, %1, %cst {dimension_numbers = #tpu.dot_dimension_numbers<[1], [0], [0], [1], [0, 0, 1, 1], [], []>} : vector<32x2xf32>, vector<2x128xf32>, vector<32x128xf32> -> vector<32x128xf32>
    %c0_3 = arith.constant 0 : index
    %c0_4 = arith.constant 0 : index
    %3 = vector.load %arg3[%c0_3, %c0_4] : memref<32x1xf32, #tpu.memory_space<vmem>>, vector<32x1xf32>
    %4 = vector.broadcast %3 : vector<32x1xf32> to vector<32x128xf32>
    %5 = arith.addf %2, %4 : vector<32x128xf32>
    %cst_5 = arith.constant 3.000000e+01 : f32
    %6 = vector.broadcast %cst_5 : f32 to vector<32x128xf32>
    %7 = arith.mulf %6, %5 : vector<32x128xf32>
    %8 = math.sin %7 : vector<32x128xf32>
    %9 = vector.shape_cast %8 : vector<32x128xf32> to vector<1x32x128xf32>
    %c0_6 = arith.constant 0 : index
    %c0_7 = arith.constant 0 : index
    %c0_8 = arith.constant 0 : index
    %10 = vector.load %arg4[%c0_6, %c0_7, %c0_8] : memref<1x32x32xf32, #tpu.memory_space<vmem>>, vector<1x32x32xf32>
    "tpu.trace_start"() <{level = 10 : i32, message = "bkh,bhn->bkn"}> : () -> ()
    %cst_9 = arith.constant dense<0.000000e+00> : vector<1x32x128xf32>
    %11 = tpu.matmul %10, %9, %cst_9 {dimension_numbers = #tpu.dot_dimension_numbers<[2], [1], [1], [2], [0, 0, 0, 1, 1, 2], [0], [0]>} : vector<1x32x32xf32>, vector<1x32x128xf32>, vector<1x32x128xf32> -> vector<1x32x128xf32>
    "tpu.trace_stop"() : () -> ()
    %c0_10 = arith.constant 0 : index
    %c0_11 = arith.constant 0 : index
    %c0_12 = arith.constant 0 : index
    %12 = vector.load %arg5[%c0_10, %c0_11, %c0_12] : memref<1x32x1xf32, #tpu.memory_space<vmem>>, vector<1x32x1xf32>
    %13 = vector.broadcast %12 : vector<1x32x1xf32> to vector<1x32x128xf32>
    %14 = arith.addf %11, %13 : vector<1x32x128xf32>
    %cst_13 = arith.constant 3.000000e+01 : f32
    %15 = vector.broadcast %cst_13 : f32 to vector<1x32x128xf32>
    %16 = arith.mulf %15, %14 : vector<1x32x128xf32>
    %17 = math.sin %16 : vector<1x32x128xf32>
    %c0_14 = arith.constant 0 : index
    %c0_15 = arith.constant 0 : index
    %c0_16 = arith.constant 0 : index
    %18 = vector.load %arg6[%c0_14, %c0_15, %c0_16] : memref<1x1x32xf32, #tpu.memory_space<vmem>>, vector<1x1x32xf32>
    "tpu.trace_start"() <{level = 10 : i32, message = "bok,bkn->bon"}> : () -> ()
    %cst_17 = arith.constant dense<0.000000e+00> : vector<1x1x128xf32>
    %19 = tpu.matmul %18, %17, %cst_17 {dimension_numbers = #tpu.dot_dimension_numbers<[2], [1], [1], [2], [0, 0, 0, 1, 1, 2], [0], [0]>} : vector<1x1x32xf32>, vector<1x32x128xf32>, vector<1x1x128xf32> -> vector<1x1x128xf32>
    "tpu.trace_stop"() : () -> ()
    %c0_18 = arith.constant 0 : index
    %c0_19 = arith.constant 0 : index
    %c0_20 = arith.constant 0 : index
    %20 = vector.load %arg7[%c0_18, %c0_19, %c0_20] : memref<1x1x1xf32, #tpu.memory_space<vmem>>, vector<1x1x1xf32>
    %21 = vector.broadcast %20 : vector<1x1x1xf32> to vector<1x1x128xf32>
    %22 = arith.addf %19, %21 : vector<1x1x128xf32>
    %cst_21 = arith.constant 5.000000e-01 : f32
    %23 = vector.broadcast %cst_21 : f32 to vector<1x1x128xf32>
    %24 = arith.addf %22, %23 : vector<1x1x128xf32>
    %c0_22 = arith.constant 0 : index
    %c0_23 = arith.constant 0 : index
    %c0_24 = arith.constant 0 : index
    %25 = vector.load %arg8[%c0_22, %c0_23, %c0_24] : memref<1x72x128xf32, #tpu.memory_space<vmem>>, vector<1x32x128xf32>
    tpu.vector_store %arg8[%c0_22, %c0_23, %c0_24], %9 {strides = array<i32>} : memref<1x72x128xf32, #tpu.memory_space<vmem>>, vector<1x32x128xf32>,
    %c0_25 = arith.constant 0 : index
    %c32 = arith.constant 32 : index
    %c0_26 = arith.constant 0 : index
    %26 = vector.load %arg8[%c0_25, %c32, %c0_26] : memref<1x72x128xf32, #tpu.memory_space<vmem>>, vector<1x32x128xf32>
    tpu.vector_store %arg8[%c0_25, %c32, %c0_26], %17 {strides = array<i32>} : memref<1x72x128xf32, #tpu.memory_space<vmem>>, vector<1x32x128xf32>,
    %cst_27 = arith.constant 0.000000e+00 : f32
    %27 = vector.broadcast %cst_27 : f32 to vector<1x7x128xf32>
    %28 = tpu.concatenate %24, %27 in 1 : vector<1x1x128xf32>, vector<1x7x128xf32> -> vector<1x8x128xf32>
    %c0_28 = arith.constant 0 : index
    %c64 = arith.constant 64 : index
    %c0_29 = arith.constant 0 : index
    %29 = vector.load %arg8[%c0_28, %c64, %c0_29] : memref<1x72x128xf32, #tpu.memory_space<vmem>>, vector<1x8x128xf32>
    tpu.vector_store %arg8[%c0_28, %c64, %c0_29], %28 {strides = array<i32>} : memref<1x72x128xf32, #tpu.memory_space<vmem>>, vector<1x8x128xf32>,
    return
  }
  func.func @transform_0(%arg0: i32) -> (i32, i32) {
    %c0_i32 = arith.constant 0 : i32
    %c0_i32_0 = arith.constant 0 : i32
    %c0_i32_1 = arith.constant 0 : i32
    return %c0_i32, %c0_i32_0 : i32, i32
  }
  func.func @transform_1(%arg0: i32) -> (i32, i32) {
    %c0_i32 = arith.constant 0 : i32
    %c0_i32_0 = arith.constant 0 : i32
    return %arg0, %c0_i32 : i32, i32
  }
  func.func @transform_2(%arg0: i32) -> (i32, i32) {
    %c0_i32 = arith.constant 0 : i32
    %c0_i32_0 = arith.constant 0 : i32
    return %arg0, %c0_i32 : i32, i32
  }
  func.func @transform_3(%arg0: i32) -> (i32, i32, i32) {
    %c0_i32 = arith.constant 0 : i32
    %c0_i32_0 = arith.constant 0 : i32
    %c0_i32_1 = arith.constant 0 : i32
    return %arg0, %c0_i32, %c0_i32_0 : i32, i32, i32
  }
  func.func @transform_4(%arg0: i32) -> (i32, i32, i32) {
    %c0_i32 = arith.constant 0 : i32
    %c0_i32_0 = arith.constant 0 : i32
    %c0_i32_1 = arith.constant 0 : i32
    return %arg0, %c0_i32, %c0_i32_0 : i32, i32, i32
  }
  func.func @transform_5(%arg0: i32) -> (i32, i32, i32) {
    %c0_i32 = arith.constant 0 : i32
    %c0_i32_0 = arith.constant 0 : i32
    %c0_i32_1 = arith.constant 0 : i32
    return %arg0, %c0_i32, %c0_i32_0 : i32, i32, i32
  }
  func.func @transform_6(%arg0: i32) -> (i32, i32, i32) {
    %c0_i32 = arith.constant 0 : i32
    %c0_i32_0 = arith.constant 0 : i32
    %c0_i32_1 = arith.constant 0 : i32
    return %arg0, %c0_i32, %c0_i32_0 : i32, i32, i32
  }
  func.func @transform_7(%arg0: i32) -> (i32, i32, i32) {
    %c0_i32 = arith.constant 0 : i32
    %c0_i32_0 = arith.constant 0 : i32
    %c0_i32_1 = arith.constant 0 : i32
    return %arg0, %c0_i32, %c0_i32_0 : i32, i32, i32
  }
}

</mosaic_0001>

<bundles_post_ra>
// kernel: tpu_custom_call.1
= control target key start
LH: loop header
LB: loop body
LE: loop exit
PB: predicated region body
PF: predicated region fallthrough
CT: control target
= control target key end

     0   :  { %12 = vsyncpa [#allocation3], 0  ;;  %s2818_s0 = inlined_call_operand.vmem [shape: f32[2,128], index: 0, kind: input, shape index: {}]   ;;  %s2819_s1 = inlined_call_operand.vmem [shape: f32[64,2], index: 1, kind: input, shape index: {}]   ;;  %s2820_s2 = inlined_call_operand.vmem [shape: f32[64,1], index: 2, kind: input, shape index: {}]   ;;  %s2821_s3 = inlined_call_operand.vmem [shape: f32[2,32,32], index: 3, kind: input, shape index: {}]   ;;  %s2822_s4 = inlined_call_operand.vmem [shape: f32[2,32,1], index: 4, kind: input, shape index: {}]   ;;  %s2823_s5 = inlined_call_operand.vmem [shape: f32[2,1,32], index: 5, kind: input, shape index: {}]   ;;  %s2824_s6 = inlined_call_operand.vmem [shape: f32[2,1,1], index: 6, kind: input, shape index: {}]   ;;  %s2825_s7 = inlined_call_operand.hbm [shape: f32[2,72,128], index: 7, kind: output, shape index: {}]  }
   0x1   :  { %14 = vsyncpa [#allocation3 + $0x1], 0  ;;  %s2034_s24 = smov 0   ;;  %s2036_s25 = smov 0  }
   0x2   :  { %s2038_s26 = smov 0   ;;  %s2040_s27 = smov 0  }
   0x3 LB: > { %s2055_s28 = sadd.s32 4294967295, %s1980_s27   ;;  %s1692_s29 = sadd.s32 4294967294, %s1980_s27   ;;  %s1980_s27 = sphi %s2040_s27, %s2843_s27   ;;  %s1976_s26 = sphi %s2038_s26, %s2842_s26   ;;  %s1972_s25 = sphi %s2036_s25, %s2841_s25   ;;  %s1968_s24 = sphi %s2034_s24, %s2840_s24  }
   0x4   : > { %s2059_s30 = sadd.s32 1, %s1980_s27   ;;  %s204_s8 = sadd.s32 1, %s1976_s26 }
   0x5   : > { %s201_s9 = ssub.s32 %s1980_s27, %s2059_s30  ;;  %p214_p0 = scmp.ne.s32.totalorder %s1976_s26, %s1972_s25 }
   0x6   : > { %p202_p1 = scmp.eq.s32.totalorder %s201_s9, 0  ;;  %p215_p2 = scmp.eq.s32.totalorder %s2055_s28, 1 }
   0x7   : > { %p220_p3 = scmp.ne.s32.totalorder %s1972_s25, %s1968_s24  ;;  %p221_p4 = scmp.eq.s32.totalorder %s1692_s29, 1 }
   0x8   : > { %s2070_s10 = scalar_select %p202_p1, %s1976_s26, %s204_s8  }
   0x9   : > { %p2072_p5 = por %p215_p2, %p214_p0  ;;  %p2076_p6 = por %p221_p4, %p220_p3 }
   0xa   : > { %p1695_p7 = scmp.ge.s32.totalorder %s1980_s27, 1  ;;  %p288_p8 = scmp.lt.s32.totalorder %s1980_s27, 3 }
   0xc   : > { %p289_p9 = pnand %p1695_p7, %p288_p8 }
   0xd   : > { %s1696_s15 = sshll.u32 (!%p289_p9), %s2055_s28, 2  ;;  %p353_p11 = scmp.lt.s32.totalorder (!%p289_p9), %s2055_s28, 1 }
   0xe   : > { %292 = sbr.rel (%p289_p9) target bundleno = 907 (0x38b), region = 48  ;;  %p342_p10 = scmp.lt.s32.totalorder (!%p289_p9), %s1696_s15, 7 }
   0xf   : > { %s338_s21 = sand.u32 (!%p289_p9), 1, %s1972_s25   ;;  %s1991_s19 = smov (!%p289_p9), [#allocation2]  }
  0x10   : > { %s1802_s22 = smul.u32 (!%p289_p9), 72, %s338_s21  ;;  %s2778_s18 = scalar_lea.sflag (!%p289_p9), [#allocation3], %s338_s21 }
  0x13   : > { %v373_v0 = vld [vmem:[%s2818_s0] sm:$0x3]  ;;  %vm411_vm0 = vcmask 1041408   ;;  %v1982_v1 = vmov 0   ;;  %s2845_s15 = smov (!%p342_p10, %s1696_s15), 7  ;;  %vm398_vm1 = vcmask 15360  }
  0x14   : > { %1769 = vmatprep.subr.msk.mxu0 %vm411_vm0, %v373_v0  ;;  %1886 = vset.pattern.permute.xlu0 %v1982_v1  ;;  %s2088_s16 = scalar_select %p353_p11, %s2055_s28, 1  ;;  %v1983_v58 = vmov 920167782   ;;  %v1984_v62 = vmov 2102212464  }
  0x15   : > { %1770 = vmatpush3.msk.msra.mxu0 %vm411_vm0, %v373_v0  ;;  %1887 = vset.pattern.permute.xlu1 %v1982_v1  ;;  %s1697_s17 = sshll.u32 %s2845_s15, 3  ;;  %v1985_v0 = vmov 1326507024  }
  0x16   : > { %s345_s20 = scalar_lea.vmem %s2819_s1, %s1697_s17  ;;  %s351_s23 = scalar_lea.vmem %s2820_s2, %s1697_s17 }
  0x17   : > { %v369_v2 = vld [vmem:[%s345_s20] sm:$0xff]  ;;  %v370_v3 = vld [vmem:[%s345_s20 + $0x8] sm:$0xff]  ;;  %v371_v4 = vld [vmem:[%s345_s20 + $0x10] sm:$0xff]  ;;  %s1749_s29 = sshll.u32 %s2088_s16, 5  ;;  %s368_s17 = scalar_lea.vmem %s2824_s6, %s2088_s16 }
  0x18   : > { %1771 = vmatprep.mubr.msk.f32.mxu0 %vm398_vm1, %v369_v2  ;;  %v377_v5 = vld [vmem:[%s351_s23 + $0x18] sm:$0xff]  ;;  %v375_v6 = vld [vmem:[%s351_s23 + $0x8] sm:$0xff]  ;;  %v376_v8 = vld [vmem:[%s351_s23 + $0x10] sm:$0xff]  ;;  %s362_s13 = scalar_lea.vmem %s2822_s4, %s1749_s29  ;;  %s365_s9 = scalar_lea.vmem %s2823_s5, %s2088_s16 }
  0x19   : > { %1772 = vmatmul.mubr.msk.f32.vlgmr.msra.gmra.mxu0 %vm398_vm1, %v370_v3  ;;  %395 = vperm.xlu0 %1886, %v377_v5   ;;  %v372_v7 = vld [vmem:[%s345_s20 + $0x18] sm:$0xff]  ;;  %v374_v9 = vld [vmem:[%s351_s23] sm:$0xff]  ;;  %v926_v11 = vld [vmem:[%s362_s13 + $0x10] sm:$0xff]  ;;  %s2385_s20 = scalar_lea.vmem %s2821_s3, %s1749_s29  ;;  %s2457_s23 = scalar_lea.vmem [#allocation2], %s1802_s22 }
  0x1a   : > { %1774 = vmatprep.mubr.msk.f32.mxu0 %vm398_vm1, %v371_v4  ;;  %385 = vperm.xlu1 %1887, %v375_v6   ;;  %v927_v10 = vld [vmem:[%s362_s13 + $0x18] sm:$0xff]  ;;  %v925_v12 = vld [vmem:[%s362_s13 + $0x8] sm:$0xff]  ;;  %v924_v13 = vld [vmem:[%s362_s13] sm:$0xff]  ;;  %s1835_s16 = smul.u32 1152, %s2055_s28  ;;  %s1576_s13 = sshll.u32 %s2457_s23, 4  ;;  %s2768_s13 = int_to_ptr.vmem [resolvable:$true] %s1576_s13 }
  0x1b   : > { %v1467_v14 = vld [vmem:[%s368_s17] sm:$0x1]  ;;  %s1920_s28 = scalar_lea.vmem %s2768_s13, 1152 }
  0x1c   : > { %s2773_s17 = scalar_lea.hbm %s2825_s7, %s1835_s16  ;;  %p1921_p12 = scmp.ne.s32.totalorder %s2768_s13, %s1920_s28 }
  0x1d   : > { %1775 = vmatmul.mubr.msk.f32.gmra.mxu0 %vm398_vm1, %v372_v7  ;;  %390 = vperm.xlu0 %1886, %v376_v8  }
  0x1e   : > { %380 = vperm.xlu1 %1887, %v374_v9   ;;  %p1922_p13 = pnand %p1921_p12, %p2072_p5 }
  0x20   : > { %p1923_p0 = pneg %p1922_p13 }
  0x21   : > { %945 = vperm.xlu0 %1886, %v927_v10  }
  0x22   : > { %940 = vperm.xlu1 %1887, %v926_v11  }
  0x25   : > { %935 = vperm.xlu0 %1886, %v925_v12  }
  0x26   : > { %930 = vperm.xlu1 %1887, %v924_v13  }
  0x29   : > { %1470 = vperm.xlu0 %1886, %v1467_v14  }
  0x94   : > { %v396_v16 = vpop.permute.xlu0 %395 }
  0x95   : > { %v386_v15 = vpop.permute.xlu1 %385 }
  0x98   : > { %v391_v27 = vpop.permute.xlu0 %390 }
  0x99   : > { %v381_v19 = vpop.permute.xlu1 %380 }
  0xd9   : > { %v1773_v17 = vpop.f32.mrf.mxu0 }
  0xda   : > { %v487_v18 = vadd.f32 %v1773_v17, %v386_v15 }
  0xdb   : > { %v481_v20 = vpop.f32.mrf.mxu0 }
  0xdc   : > { %v2110_v21 = vmul.f32 30.0, %v487_v18  ;;  %v482_v22 = vadd.f32 %v481_v20, %v381_v19 }
  0xdd   : > { %v1776_v23 = vpop.f32.mrf.mxu0 }
  0xde   : > { %v611_v24 = vand.u32 2139095040, %v2110_v21  ;;  %v2113_v25 = vmul.f32 30.0, %v482_v22  ;;  %v497_v26 = vadd.f32 %v1776_v23, %v396_v16  ;;  %v608_v44 = vand.u32 2147483647, %v2110_v21 }
  0xdf   : > { %v491_v28 = vpop.f32.mrf.mxu0  ;;  %v1986_v22 = vmov 683565275  }
  0xe0   : > { %v612_v29 = vshrl.u32 %v611_v24, 23  ;;  %v507_v30 = vand.u32 2139095040, %v2113_v25  ;;  %v2116_v31 = vmul.f32 30.0, %v497_v26  ;;  %v492_v32 = vadd.f32 %v491_v28, %v391_v27 }
  0xe1   : > { %v2134_v53 = vand.u32 8388607, %v608_v44  ;;  %v1987_v24 = vmov 2475754826  }
  0xe2   : > { %v1713_v33 = vadd.s32 4294967169, %v612_v29  ;;  %v508_v34 = vshrl.u32 %v507_v30, 23  ;;  %v819_v35 = vand.u32 2139095040, %v2116_v31  ;;  %v2119_v36 = vmul.f32 30.0, %v492_v32 }
  0xe3   : > { %v816_v40 = vand.u32 2147483647, %v2116_v31  ;;  %v616_v61 = vor.u32 8388608, %v2134_v53 }
  0xe4   : > { %v618_v37 = vadd.s32 1, %v1713_v33  ;;  %v820_v38 = vshrl.u32 %v819_v35, 23  ;;  %v715_v39 = vand.u32 2139095040, %v2119_v36  ;;  %v1709_v41 = vadd.s32 4294967169, %v508_v34 }
  0xe5   : > { %v712_v46 = vand.u32 2147483647, %v2119_v36  ;;  %v823_v49 = vand.u32 8388607, %v816_v40 }
  0xe6   : > { %vm619_vm2 = vcmp.gt.s32.totalorder %v618_v37, 0  ;;  %v1721_v42 = vadd.s32 4294967169, %v820_v38  ;;  %v716_v43 = vshrl.u32 %v715_v39, 23  ;;  %v514_v50 = vadd.s32 1, %v1709_v41 }
  0xe7   : > { %v620_v45 = vsel %vm619_vm2, %v618_v37, 0  ;;  %v719_v55 = vand.u32 8388607, %v712_v46  ;;  %v824_v57 = vor.u32 8388608, %v823_v49  ;;  %v1988_v38 = vmov 2131351028  }
  0xe8   : > { %v2125_v47 = vand.u32 31, %v620_v45  ;;  %v826_v48 = vadd.s32 1, %v1721_v42  ;;  %v1717_v51 = vadd.s32 4294967169, %v716_v43  ;;  %vm515_vm4 = vcmp.gt.s32.totalorder %v514_v50, 0 }
  0xe9   : > { %v720_v2 = vor.u32 8388608, %v719_v55  ;;  %v2147_v3 = vshrl.u32 %v620_v45, 5  ;;  %v2149_v4 = vsel %vm515_vm4, %v514_v50, 0  ;;  %v2151_v6 = vshll.u32 %v824_v57, 8 }
  0xea   : > { %v2130_v52 = vsub.s32 32, %v2125_v47  ;;  %vm827_vm3 = vcmp.gt.s32.totalorder %v826_v48, 0  ;;  %v722_v54 = vadd.s32 1, %v1717_v51  ;;  %v634_v63 = vshll.u32 %v1984_v62, %v2125_v47 }
  0xeb   : > { %v828_v56 = vsel %vm827_vm3, %v826_v48, 0  ;;  %v2157_v8 = vshll.u32 %v1983_v58, %v2125_v47  ;;  %v2167_v18 = vshll.u32 %v720_v2, 8  ;;  %vm643_vm11 = vcmp.lt.s32.totalorder %v2147_v3, 4 }
  0xec   : > { %v635_v59 = vshrl.u32 %v1983_v58, %v2130_v52  ;;  %v830_v60 = vand.u32 31, %v828_v56  ;;  %v2145_v1 = vshrl.u32 %v1985_v0, %v2130_v52  ;;  %vm723_vm5 = vcmp.gt.s32.totalorder %v722_v54, 0 }
  0xed   : > { %v829_v9 = vshrl.u32 %v828_v56, 5  ;;  %v724_v14 = vsel %vm723_vm5, %v722_v54, 0  ;;  %vm640_vm1 = vcmp.lt.s32.totalorder %v2147_v3, 1  ;;  %vm641_vm2 = vcmp.lt.s32.totalorder %v2147_v3, 2 }
  0xee   : > { %v831_v5 = vsub.s32 32, %v830_v60  ;;  %v2153_v7 = vor.u32 %v635_v59, %v634_v63  ;;  %v842_v10 = vshll.u32 %v1984_v62, %v830_v60  ;;  %v845_v12 = vshll.u32 %v1983_v58, %v830_v60 }
  0xef   : > { %v639_v15 = vor.u32 %v2145_v1, %v2157_v8  ;;  %v2165_v16 = vshrl.u32 %v724_v14, 5  ;;  %v726_v17 = vand.u32 31, %v724_v14  ;;  %v833_v23 = vshll.u32 %v1986_v22, %v830_v60 }
  0xf0   : > { %v843_v11 = vshrl.u32 %v1983_v58, %v831_v5  ;;  %v846_v13 = vshrl.u32 %v1985_v0, %v831_v5  ;;  %v834_v26 = vshrl.u32 %v1987_v24, %v831_v5  ;;  %vm851_vm6 = vcmp.lt.s32.totalorder %v829_v9, 4 }
  0xf1   : > { %v727_v27 = vsub.s32 32, %v726_v17  ;;  %v738_v28 = vshll.u32 %v1984_v62, %v726_v17  ;;  %v832_v29 = vshrl.u32 %v1986_v22, %v831_v5  ;;  %v741_v32 = vshll.u32 %v1983_v58, %v726_v17 }
  0xf2   : > { %v844_v19 = vor.u32 %v843_v11, %v842_v10  ;;  %v847_v20 = vor.u32 %v846_v13, %v845_v12  ;;  %vm747_vm7 = vcmp.lt.s32.totalorder %v2165_v16, 4  ;;  %v835_v33 = vor.u32 %v834_v26, %v833_v23 }
  0xf3   : > { %v739_v34 = vshrl.u32 %v1983_v58, %v727_v27  ;;  %v742_v35 = vshrl.u32 %v1985_v0, %v727_v27  ;;  %v836_v37 = vshll.u32 %v1987_v24, %v830_v60  ;;  %v837_v39 = vshrl.u32 %v1988_v38, %v831_v5 }
  0xf4   : > { %v861_v30 = vsel %vm851_vm6, %v847_v20, 1326507024  ;;  %v857_v41 = vsel %vm851_vm6, %v844_v19, 920167782  ;;  %v839_v42 = vshll.u32 %v1988_v38, %v830_v60  ;;  %v840_v43 = vshrl.u32 %v1984_v62, %v831_v5 }
  0xf5   : > { %vm848_vm8 = vcmp.lt.s32.totalorder %v829_v9, 1  ;;  %v740_v45 = vor.u32 %v739_v34, %v738_v28  ;;  %v838_v48 = vor.u32 %v837_v39, %v836_v37  ;;  %vm849_vm9 = vcmp.lt.s32.totalorder %v829_v9, 2 }
  0xf6   : > { %vm850_vm10 = vcmp.lt.s32.totalorder %v829_v9, 3  ;;  %v743_v49 = vor.u32 %v742_v35, %v741_v32  ;;  %v841_v50 = vor.u32 %v840_v43, %v839_v42  ;;  %v852_v51 = vsel %vm848_vm8, %v832_v29, %v835_v33 }
  0xf7   : > { %v862_v54 = vsel %vm850_vm10, %v844_v19, %v861_v30  ;;  %v856_v55 = vsel %vm848_vm8, %v835_v33, %v838_v48  ;;  %v728_v56 = vshrl.u32 %v1986_v22, %v727_v27  ;;  %v729_v57 = vshll.u32 %v1986_v22, %v726_v17 }
  0xf8   : > { %v730_v59 = vshrl.u32 %v1987_v24, %v727_v27  ;;  %v853_v60 = vsel %vm851_vm6, %v841_v50, 2102212464  ;;  %v858_v63 = vsel %vm850_vm10, %v841_v50, %v857_v41  ;;  %v860_v2 = vsel %vm848_vm8, %v838_v48, %v841_v50 }
  0xf9   : > { %v732_v5 = vshll.u32 %v1987_v24, %v726_v17  ;;  %v854_v10 = vsel %vm850_vm10, %v838_v48, %v853_v60  ;;  %v859_v11 = vsel %vm849_vm9, %v856_v55, %v858_v63  ;;  %v863_v12 = vsel %vm849_vm9, %v860_v2, %v862_v54 }
  0xfa   : > { %v731_v13 = vor.u32 %v730_v59, %v729_v57  ;;  %v855_v14 = vsel %vm849_vm9, %v852_v51, %v854_v10  ;;  %v2192_v19 = vmul.u32.u64.low %v2151_v6, %v863_v12  ;;  %v2193_v20 = vmul.u32.u64.high %v2151_v6, %v863_v12, %v2192_v19 }
  0xfb   : > { %v733_v23 = vshrl.u32 %v1988_v38, %v727_v27  ;;  %v753_v26 = vsel %vm747_vm7, %v740_v45, 920167782  ;;  %v757_v28 = vsel %vm747_vm7, %v743_v49, 1326507024  ;;  %v735_v32 = vshll.u32 %v1988_v38, %v726_v17 }
  0xfc   : > { %v2201_v29 = vmul.u32.u64.low %v2151_v6, %v859_v11  ;;  %v2202_v30 = vmul.u32.u64.high %v2151_v6, %v859_v11, %v2201_v29  ;;  %v736_v33 = vshrl.u32 %v1984_v62, %v727_v27  ;;  %vm744_vm12 = vcmp.lt.s32.totalorder %v2165_v16, 1 }
  0xfd   : > { %v734_v9 = vor.u32 %v733_v23, %v732_v5  ;;  %v871_v34 = vmul.u32 %v2151_v6, %v855_v14  ;;  %vm745_vm13 = vcmp.lt.s32.totalorder %v2165_v16, 2  ;;  %vm746_vm14 = vcmp.lt.s32.totalorder %v2165_v16, 3 }
  0xfe   : > { %v748_v35 = vsel %vm744_vm12, %v728_v56, %v731_v13  ;;  %vm873_vm15 = vc.u32 %v2193_v20, %v2201_v29  ;;  %v737_v37 = vor.u32 %v736_v33, %v735_v32  ;;  %v625_v27 = vshll.u32 %v1986_v22, %v2125_v47 }
  0xff   : > { %v752_v17 = vsel %vm744_vm12, %v731_v13, %v734_v9  ;;  %v874_v39 = vadd.s32 1, %v2202_v30  ;;  %v758_v6 = vsel %vm746_vm14, %v740_v45, %v757_v28  ;;  %v626_v41 = vshrl.u32 %v1987_v24, %v2130_v52 }
 0x100   : > { %v628_v42 = vshll.u32 %v1987_v24, %v2125_v47  ;;  %v749_v43 = vsel %vm747_vm7, %v737_v37, 2102212464  ;;  %v754_v48 = vsel %vm746_vm14, %v737_v37, %v753_v26  ;;  %v756_v49 = vsel %vm744_vm12, %v734_v9, %v737_v37 }
 0x101   : > { %v629_v50 = vshrl.u32 %v1988_v38, %v2130_v52  ;;  %v875_v51 = vsel %vm873_vm15, %v874_v39, %v2202_v30  ;;  %v750_v54 = vsel %vm746_vm14, %v734_v9, %v749_v43  ;;  %v755_v45 = vsel %vm745_vm13, %v752_v17, %v754_v48 }
 0x102   : > { %v759_v55 = vsel %vm745_vm13, %v756_v49, %v758_v6  ;;  %v876_v56 = vadd.s32 %v875_v51, %v871_v34  ;;  %v751_v57 = vsel %vm745_vm13, %v748_v35, %v750_v54  ;;  %v2243_v63 = vand.u32 31, %v2149_v4 }
 0x103   : > { %v2239_v59 = vmul.u32.u64.low %v2167_v18, %v759_v55  ;;  %v2240_v60 = vmul.u32.u64.high %v2167_v18, %v759_v55, %v2239_v59  ;;  %v2246_v2 = vmul.u32.u64.low %v2167_v18, %v755_v45  ;;  %v2247_v5 = vmul.u32.u64.high %v2167_v18, %v755_v45, %v2246_v2 }
 0x104   : > { %v627_v10 = vor.u32 %v626_v41, %v625_v27  ;;  %v877_v11 = vadd.s32 536870912, %v876_v56  ;;  %v630_v12 = vor.u32 %v629_v50, %v628_v42  ;;  %v631_v13 = vshll.u32 %v1988_v38, %v2125_v47 }
 0x105   : > { %v632_v16 = vshrl.u32 %v1984_v62, %v2130_v52  ;;  %v649_v14 = vsel %vm643_vm11, %v2153_v7, 920167782  ;;  %v653_v19 = vsel %vm643_vm11, %v639_v15, 1326507024  ;;  %v767_v23 = vmul.u32 %v2167_v18, %v751_v57 }
 0x106   : > { %v624_v26 = vshrl.u32 %v1986_v22, %v2130_v52  ;;  %v2265_v28 = vshrl.u32 %v877_v11, 30  ;;  %vm769_vm0 = vc.u32 %v2240_v60, %v2246_v2  ;;  %v770_v30 = vadd.s32 1, %v2247_v5 }
 0x107   : > { %v633_v47 = vor.u32 %v632_v16, %v631_v13  ;;  %vm642_vm3 = vcmp.lt.s32.totalorder %v2147_v3, 3  ;;  %v648_v1 = vsel %vm640_vm1, %v627_v10, %v630_v12  ;;  %v656_v34 = vshll.u32 %v616_v61, 8 }
 0x108   : > { %v879_v8 = vshll.u32 %v2265_v28, 30  ;;  %v654_v18 = vsel %vm642_vm3, %v2153_v7, %v653_v19  ;;  %v771_v9 = vsel %vm769_vm0, %v770_v30, %v2247_v5  ;;  %v2287_v35 = vsub.s32 32, %v2243_v63 }
 0x109   : > { %v645_v52 = vsel %vm643_vm11, %v633_v47, 2102212464  ;;  %v650_v15 = vsel %vm642_vm3, %v633_v47, %v649_v14  ;;  %v652_v33 = vsel %vm640_vm1, %v630_v12, %v633_v47  ;;  %v772_v17 = vadd.s32 %v771_v9, %v767_v23 }
 0x10a   : > { %v651_v32 = vsel %vm641_vm2, %v648_v1, %v650_v15  ;;  %v880_v37 = vsub.s32 %v876_v56, %v879_v8  ;;  %v644_v27 = vsel %vm640_vm1, %v624_v26, %v627_v10  ;;  %v646_v7 = vsel %vm642_vm3, %v630_v12, %v645_v52 }
 0x10b   : > { %v655_v39 = vsel %vm641_vm2, %v652_v33, %v654_v18  ;;  %v2293_v6 = vmul.u32.u64.low %v656_v34, %v651_v32  ;;  %v2294_v41 = vmul.u32.u64.high %v656_v34, %v651_v32, %v2293_v6  ;;  %v773_v43 = vadd.s32 536870912, %v772_v17 }
 0x10c   : > { %v882_v42 = vsub.s32 0, %v880_v37  ;;  %v2296_v48 = vmul.u32.u64.low %v656_v34, %v655_v39  ;;  %v2297_v53 = vmul.u32.u64.high %v656_v34, %v655_v39, %v2296_v48  ;;  %v531_v61 = vshrl.u32 %v1983_v58, %v2287_v35 }
 0x10d   : > { %v2301_v50 = vshrl.u32 %v773_v43, 30  ;;  %v647_v51 = vsel %vm641_vm2, %v644_v27, %v646_v7  ;;  %v534_v54 = vshrl.u32 %v1985_v0, %v2287_v35  ;;  %v666_v45 = vadd.s32 1, %v2294_v41 }
 0x10e   : > { %v1722_v49 = vmin.u32 %v882_v42, %v880_v37  ;;  %v2309_v55 = vshrl.u32 %v2149_v4, 5  ;;  %v530_v56 = vshll.u32 %v1984_v62, %v2243_v63  ;;  %v533_v59 = vshll.u32 %v1983_v58, %v2243_v63 }
 0x10f   : > { %v775_v5 = vshll.u32 %v2301_v50, 30  ;;  %v663_v10 = vmul.u32 %v656_v34, %v647_v51  ;;  %vm665_vm4 = vc.u32 %v2297_v53, %v2293_v6  ;;  %vm818_vm5 = vcmp.lt.s32.totalorder %v2116_v31, 0 }
 0x110   : > { %v884_v57 = vclz %v1722_v49  ;;  %v2317_v3 = vor.u32 %v531_v61, %v530_v56  ;;  %v667_v12 = vsel %vm665_vm4, %v666_v45, %v2294_v41  ;;  %v535_v13 = vor.u32 %v534_v54, %v533_v59 }
 0x111   : > { %v2320_v4 = vsub.s32 %v772_v17, %v775_v5  ;;  %v668_v16 = vadd.s32 %v667_v12, %v663_v10  ;;  %v902_v14 = vsub.s32 4, %v2265_v28  ;;  %v504_v19 = vand.u32 2147483647, %v2113_v25 }
 0x112   : > { %v1723_v11 = vadd.s32 4294967294, %v884_v57  ;;  %vm539_vm7 = vcmp.lt.s32.totalorder %v2309_v55, 4  ;;  %v872_v1 = vadd.s32 %v2201_v29, %v2193_v20  ;;  %v768_v18 = vadd.s32 %v2246_v2, %v2240_v60 }
 0x113   : > { %v778_v26 = vsub.s32 0, %v2320_v4  ;;  %v669_v47 = vadd.s32 536870912, %v668_v16  ;;  %v545_v30 = vsel %vm539_vm7, %v2317_v3, 920167782  ;;  %v549_v15 = vsel %vm539_vm7, %v535_v13, 1326507024 }
 0x114   : > { %vm1724_vm6 = vcmp.lt.s32.totalorder %v1723_v11, 0  ;;  %v2342_v27 = vsel %vm818_vm5, %v902_v14, %v2265_v28  ;;  %v522_v29 = vshrl.u32 %v1987_v24, %v2287_v35  ;;  %v525_v7 = vshrl.u32 %v1988_v38, %v2287_v35 }
 0x115   : > { %v887_v23 = vsel %vm1724_vm6, 0, %v1723_v11  ;;  %v1718_v9 = vmin.u32 %v778_v26, %v2320_v4  ;;  %v2337_v32 = vshrl.u32 %v669_v47, 30  ;;  %v528_v60 = vshrl.u32 %v1984_v62, %v2287_v35 }
 0x116   : > { %v888_v8 = vsub.s32 32, %v887_v23  ;;  %v892_v52 = vsub.s32 4294967266, %v887_v23  ;;  %v889_v33 = vshll.u32 %v880_v37, %v887_v23  ;;  %v511_v41 = vand.u32 8388607, %v504_v19 }
 0x117   : > { %v780_v20 = vclz %v1718_v9  ;;  %v671_v37 = vshll.u32 %v2337_v32, 30  ;;  %v521_v28 = vshll.u32 %v1986_v22, %v2243_v63  ;;  %v524_v43 = vshll.u32 %v1987_v24, %v2243_v63 }
 0x118   : > { %v890_v34 = vshrl.u32 %v872_v1, %v888_v8  ;;  %v893_v17 = vadd.s32 127, %v892_v52  ;;  %v527_v48 = vshll.u32 %v1988_v38, %v2243_v63  ;;  %vm2361_vm8 = vcmp.le.f32.partialorder %v816_v40, 0.7853982 }
 0x119   : > { %v1719_v42 = vadd.s32 4294967294, %v780_v20  ;;  %v664_v51 = vadd.s32 %v2293_v6, %v2297_v53  ;;  %v2366_v54 = vsub.s32 %v668_v16, %v671_v37  ;;  %v520_v45 = vshrl.u32 %v1986_v22, %v2287_v35  ;;  %v920_v37 = vld [vmem:[%s2385_s20] sm:$0xff] }
 0x11a   : > { %v891_v2 = vor.u32 %v890_v34, %v889_v33  ;;  %v894_v39 = vshll.u32 %v893_v17, 23  ;;  %v523_v56 = vor.u32 %v522_v29, %v521_v28  ;;  %v526_v57 = vor.u32 %v525_v7, %v524_v43 }
 0x11b   : > { %vm1720_vm9 = vcmp.lt.s32.totalorder %v1719_v42, 0  ;;  %v529_v59 = vor.u32 %v528_v60, %v527_v48  ;;  %v674_v40 = vsub.s32 0, %v2366_v54  ;;  %v512_v13 = vor.u32 8388608, %v511_v41 }
 0x11c   : > { %v895_v49 = vor.u32 4788187, %v894_v39  ;;  %v898_v63 = vcvt.s32.f32 %v891_v2  ;;  %v783_v10 = vsel %vm1720_vm9, 0, %v1719_v42  ;;  %vm536_vm10 = vcmp.lt.s32.totalorder %v2309_v55, 1 }
 0x11d   : > { %v784_v11 = vsub.s32 32, %v783_v10  ;;  %v788_v12 = vsub.s32 4294967266, %v783_v10  ;;  %v1714_v53 = vmin.u32 %v674_v40, %v2366_v54  ;;  %vm537_vm11 = vcmp.lt.s32.totalorder %v2309_v55, 2 }
 0x11e   : > { %v896_v5 = vand.u32 2147483647, %v895_v49  ;;  %vm538_vm12 = vcmp.lt.s32.totalorder %v2309_v55, 3  ;;  %v785_v35 = vshll.u32 %v2320_v4, %v783_v10  ;;  %v544_v23 = vsel %vm536_vm10, %v523_v56, %v526_v57 }
 0x11f   : > { %v786_v16 = vshrl.u32 %v768_v18, %v784_v11  ;;  %v789_v14 = vadd.s32 127, %v788_v12  ;;  %v676_v47 = vclz %v1714_v53  ;;  %v546_v1 = vsel %vm538_vm12, %v529_v59, %v545_v30 }
 0x120   : > { %v899_v6 = vmul.f32 %v898_v63, %v896_v5  ;;  %v548_v8 = vsel %vm536_vm10, %v526_v57, %v529_v59  ;;  %v540_v33 = vsel %vm536_vm10, %v520_v45, %v523_v56  ;;  %v541_v34 = vsel %vm539_vm7, %v529_v59, 2102212464 }
 0x121   : > { %v787_v52 = vor.u32 %v786_v16, %v785_v35  ;;  %v790_v9 = vshll.u32 %v789_v14, 23  ;;  %v1715_v18 = vadd.s32 4294967294, %v676_v47  ;;  %v550_v30 = vsel %vm538_vm12, %v2317_v3, %v549_v15 }
 0x122   : > { %v900_v26 = vxor.u32 2147483648, %v899_v6  ;;  %v552_v17 = vshll.u32 %v512_v13, 8  ;;  %v547_v7 = vsel %vm537_vm11, %v544_v23, %v546_v1  ;;  %v551_v60 = vsel %vm537_vm11, %v548_v8, %v550_v30 }
 0x123   : > { %v791_v29 = vor.u32 4788187, %v790_v9  ;;  %vm1716_vm13 = vcmp.lt.s32.totalorder %v1715_v18, 0  ;;  %v794_v15 = vcvt.s32.f32 %v787_v52  ;;  %v542_v43 = vsel %vm538_vm12, %v526_v57, %v541_v34 }
 0x124   : > { %v901_v4 = vsel %vm818_vm5, %v900_v26, %v899_v6  ;;  %v2399_v2 = vmul.u32.u64.low %v552_v17, %v551_v60  ;;  %v2400_v39 = vmul.u32.u64.high %v552_v17, %v551_v60, %v2399_v2  ;;  %v679_v41 = vsel %vm1716_vm13, 0, %v1715_v18 }
 0x125   : > { %v904_v20 = vsel %vm2361_vm8, %v2116_v31, %v901_v4  ;;  %v792_v3 = vand.u32 2147483647, %v791_v29  ;;  %v680_v42 = vsub.s32 32, %v679_v41  ;;  %v684_v28 = vsub.s32 4294967266, %v679_v41 }
 0x126   : > { %1888 = vcosq.f32 %v904_v20  ;;  %vm948_vm14 = vcmask 261120   ;;  %v2405_v49 = vmul.u32.u64.low %v552_v17, %v547_v7  ;;  %v2406_v45 = vmul.u32.u64.high %v552_v17, %v547_v7, %v2405_v49 }
 0x127   : > { %1890 = vsinq.f32 %v904_v20  ;;  %v795_v48 = vmul.f32 %v794_v15, %v792_v3  ;;  %1785 = vmatprep.mubr.msk.f32.mxu1 %vm948_vm14, %v920_v37  ;;  %v905_v56 = vsel %vm2361_vm8, 0, %v2342_v27  ;;  %v681_v59 = vshll.u32 %v2366_v54, %v679_v41 }
 0x128   : > { %v682_v5 = vshrl.u32 %v664_v51, %v680_v42  ;;  %v685_v63 = vadd.s32 127, %v684_v28  ;;  %v798_v40 = vsub.s32 4, %v2301_v50  ;;  %v543_v57 = vsel %vm537_vm11, %v540_v33, %v542_v43 }
 0x129   : > { %v796_v10 = vxor.u32 2147483648, %v795_v48  ;;  %vm714_vm15 = vcmp.lt.s32.totalorder %v2119_v36, 0  ;;  %vm561_vm0 = vc.u32 %v2400_v39, %v2405_v49  ;;  %v909_v61 = vadd.s32 3, %v905_v56 }
 0x12a   : > { %v683_v11 = vor.u32 %v682_v5, %v681_v59  ;;  %v686_v12 = vshll.u32 %v685_v63, 23  ;;  %vm2422_vm1 = vcmp.le.f32.partialorder %v712_v46, 0.7853982  ;;  %v562_v54 = vadd.s32 1, %v2406_v45 }
 0x12b   : > { %v797_v51 = vsel %vm714_vm15, %v796_v10, %v795_v48  ;;  %v559_v6 = vmul.u32 %v552_v17, %v543_v57  ;;  %v799_v53 = vsel %vm714_vm15, %v798_v40, %v2301_v50  ;;  %v910_v23 = vand.u32 3, %v909_v61 }
 0x12c   : > { %v800_v55 = vsel %vm2422_vm1, %v2119_v36, %v797_v51  ;;  %v687_v13 = vor.u32 4788187, %v686_v12  ;;  %v563_v35 = vsel %vm561_vm0, %v562_v54, %v2406_v45  ;;  %v690_v16 = vcvt.s32.f32 %v683_v11 }
 0x12d   : > { %1892 = vcosq.f32 %v800_v55  ;;  %v564_v14 = vadd.s32 %v563_v35, %v559_v6  ;;  %v801_v8 = vsel %vm2422_vm1, 0, %v799_v53  ;;  %vm610_vm2 = vcmp.lt.s32.totalorder %v2110_v21, 0 }
 0x12e   : > { %1894 = vsinq.f32 %v800_v55  ;;  %v688_v46 = vand.u32 2147483647, %v687_v13  ;;  %vm2438_vm3 = vcmp.le.f32.partialorder %v608_v44, 0.7853982  ;;  %vm912_vm4 = vcmp.eq.s32.totalorder %v910_v23, 0 }
 0x12f   : > { %v565_v47 = vadd.s32 536870912, %v564_v14  ;;  %vm915_vm5 = vcmp.eq.s32.totalorder %v910_v23, 2  ;;  %v694_v18 = vsub.s32 4, %v2337_v32  ;;  %v805_v17 = vadd.s32 3, %v801_v8 }
 0x130   : > { %v691_v26 = vmul.f32 %v690_v16, %v688_v46  ;;  %vm911_vm6 = vcmp.lt.s32.totalorder %v910_v23, 2  ;;  %vm908_vm7 = vweird.f32 %v2116_v31  ;;  %vm804_vm11 = vweird.f32 %v2119_v36 }
 0x131   : > { %v2442_v34 = vshrl.u32 %v565_v47, 30  ;;  %v695_v3 = vsel %vm610_vm2, %v694_v18, %v2337_v32  ;;  %v806_v15 = vand.u32 3, %v805_v17  ;;  %v560_v12 = vadd.s32 %v2405_v49, %v2400_v39 }
 0x132   : > { %v692_v33 = vxor.u32 2147483648, %v691_v26  ;;  %v697_v31 = vsel %vm2438_vm3, 0, %v695_v3  ;;  %vm700_vm1 = vweird.f32 %v2110_v21  ;;  %v1989_v3 = vmov 0.0  }
 0x133   : > { %v1889_v1 = vpop.eup %1888  ;;  %v567_v44 = vshll.u32 %v2442_v34, 30  ;;  %vm811_vm8 = vcmp.eq.s32.totalorder %v806_v15, 2  ;;  %vm808_vm9 = vcmp.eq.s32.totalorder %v806_v15, 0  ;;  %v701_v59 = vadd.s32 3, %v697_v31  ;;  %1791 = vmatprep.subr.mxu0 %v1989_v3 }
 0x134   : > { %v1891_v52 = vpop.eup %1890  ;;  %v916_v50 = vxor.u32 2147483648, %v1889_v1  ;;  %v693_v20 = vsel %vm610_vm2, %v692_v33, %v691_v26  ;;  %vm807_vm10 = vcmp.lt.s32.totalorder %v806_v15, 2  ;;  %vm506_vm2 = vcmp.lt.s32.totalorder %v2113_v25, 0  ;;  %v946_v15 = vpop.permute.xlu0 %945 }
 0x135   : > { %v913_v4 = vxor.u32 2147483648, %v1891_v52  ;;  %v696_v7 = vsel %vm2438_vm3, %v2110_v21, %v693_v20  ;;  %v568_v2 = vsub.s32 %v564_v14, %v567_v44  ;;  %v702_v57 = vand.u32 3, %v701_v59 }
 0x136   : > { %v917_v30 = vsel %vm915_vm5, %v916_v50, %v1891_v52  ;;  %1896 = vcosq.f32 %v696_v7  ;;  %v590_v52 = vsub.s32 4, %v2442_v34  ;;  %vm505_vm3 = vcmp.le.f32.partialorder %v504_v19, 0.7853982 }
 0x137   : > { %v914_v29 = vsel %vm912_vm4, %v1889_v1, %v913_v4  ;;  %1898 = vsinq.f32 %v696_v7  ;;  %v570_v41 = vsub.s32 0, %v568_v2  ;;  %vm707_vm13 = vcmp.eq.s32.totalorder %v702_v57, 2 }
 0x138   : > { %v918_v60 = vsel %vm911_vm6, %v914_v29, %v917_v30  ;;  %vm704_vm15 = vcmp.eq.s32.totalorder %v702_v57, 0  ;;  %vm703_vm0 = vcmp.lt.s32.totalorder %v702_v57, 2  ;;  %v591_v9 = vsel %vm506_vm2, %v590_v52, %v2442_v34 }
 0x139   : > { %v919_v37 = vsel %vm908_vm7, nan, %v918_v60  ;;  %v1710_v28 = vmin.u32 %v570_v41, %v568_v2  ;;  %v593_v33 = vsel %vm505_vm3, 0, %v591_v9  ;;  %vm596_vm7 = vweird.f32 %v2113_v25  ;;  %v921_v60 = vld [vmem:[%s2385_s20 + $0x8] sm:$0xff]  ;;  %v941_v41 = vpop.permute.xlu1 %940 }
 0x13a   : > { %1777 = vmatprep.subr.mxu1 %v919_v37  ;;  %1554 = vst [vmem:[%s2457_s23 + $0x18] sm:$0xff] %v919_v37  ;;  %v1893_v42 = vpop.eup %1892  ;;  %v597_v4 = vadd.s32 3, %v593_v33 }
 0x13b   : > { %1778 = vmatpush3.msra.mxu1 %v919_v37  ;;  %v1895_v43 = vpop.eup %1894  ;;  %v812_v48 = vxor.u32 2147483648, %v1893_v42  ;;  %v572_v32 = vclz %v1710_v28  ;;  %v923_v37 = vld [vmem:[%s2385_s20 + $0x18] sm:$0xff] }
 0x13c   : > { %v809_v45 = vxor.u32 2147483648, %v1895_v43  ;;  %v598_v18 = vand.u32 3, %v597_v4 }
 0x13d   : > { %v813_v56 = vsel %vm811_vm8, %v812_v48, %v1895_v43  ;;  %v1711_v63 = vadd.s32 4294967294, %v572_v32  ;;  %v931_v28 = vpop.permute.xlu1 %930 }
 0x13e   : > { %v810_v5 = vsel %vm808_vm9, %v1893_v42, %v809_v45  ;;  %vm603_vm4 = vcmp.eq.s32.totalorder %v598_v18, 2  ;;  %vm600_vm5 = vcmp.eq.s32.totalorder %v598_v18, 0  ;;  %vm599_vm6 = vcmp.lt.s32.totalorder %v598_v18, 2 }
 0x13f   : > { %v814_v10 = vsel %vm807_vm10, %v810_v5, %v813_v56  ;;  %vm1712_vm12 = vcmp.lt.s32.totalorder %v1711_v63, 0 }
 0x140   : > { %v815_v40 = vsel %vm804_vm11, nan, %v814_v10  ;;  %v575_v11 = vsel %vm1712_vm12, 0, %v1711_v63 }
 0x141   : > { %1779 = vmatprep.subr.mxu1 %v815_v40  ;;  %1553 = vst [vmem:[%s2457_s23 + $0x10] sm:$0xff] %v815_v40  ;;  %v576_v61 = vsub.s32 32, %v575_v11  ;;  %v580_v27 = vsub.s32 4294967266, %v575_v11  ;;  %v577_v13 = vshll.u32 %v568_v2, %v575_v11  ;;  %v922_v2 = vld [vmem:[%s2385_s20 + $0x10] sm:$0xff]  ;;  %s1924_s20 = sshll.u32 %s1991_s19, 4  ;;  %s1925_s20 = int_to_ptr.vmem [resolvable:$false] %s1924_s20 }
 0x142   : > { %1780 = vmatpush3.msra.mxu1 %v815_v40  ;;  %s1926_s22 = scalar_lea.vmem %s1925_s20, 2304  ;;  %p1927_p1 = scmp.lt.s32.totalorder %s2768_s13, %s1925_s20 }
 0x143   : > { %v1897_v51 = vpop.eup %1896  ;;  %v578_v6 = vshrl.u32 %v560_v12, %v576_v61  ;;  %v581_v36 = vadd.s32 127, %v580_v27  ;;  %p1928_p2 = scmp.lt.s32.totalorder %s1926_s22, %s1920_s28 }
 0x144   : > { %v1899_v54 = vpop.eup %1898  ;;  %v708_v55 = vxor.u32 2147483648, %v1897_v51 }
 0x145   : > { %v705_v53 = vxor.u32 2147483648, %v1899_v54  ;;  %v579_v46 = vor.u32 %v578_v6, %v577_v13  ;;  %v582_v16 = vshll.u32 %v581_v36, 23  ;;  %p1929_p3 = por %p1928_p2, %p1927_p1 }
 0x146   : > { %v709_v35 = vsel %vm707_vm13, %v708_v55, %v1899_v54 }
 0x147   : > { %v706_v14 = vsel %vm704_vm15, %v1897_v51, %v705_v53  ;;  %v583_v49 = vor.u32 4788187, %v582_v16  ;;  %v586_v47 = vcvt.s32.f32 %v579_v46  ;;  %p1930_p4 = pnand %p1929_p3, %p1923_p0 }
 0x148   : > { %v710_v39 = vsel %vm703_vm0, %v706_v14, %v709_v35 }
 0x149   : > { %v711_v23 = vsel %vm700_vm1, nan, %v710_v39  ;;  %v584_v26 = vand.u32 2147483647, %v583_v49 }
 0x14a   : > { %1781 = vmatprep.subr.mxu1 %v711_v23  ;;  %1552 = vst [vmem:[%s2457_s23 + $0x8] sm:$0xff] %v711_v23 }
 0x14b   : > { %1782 = vmatpush3.msra.mxu1 %v711_v23  ;;  %v587_v1 = vmul.f32 %v586_v47, %v584_v26 }
 0x14d   : > { %v588_v8 = vxor.u32 2147483648, %v587_v1 }
 0x14f   : > { %v589_v50 = vsel %vm506_vm2, %v588_v8, %v587_v1 }
 0x150   : > { %v592_v21 = vsel %vm505_vm3, %v2113_v25, %v589_v50  ;;  %v936_v25 = vpop.permute.xlu0 %935 }
 0x151   : > { %1900 = vcosq.f32 %v592_v21 }
 0x152   : > { %1902 = vsinq.f32 %v592_v21 }
 0x15e   : > { %v1901_v30 = vpop.eup %1900 }
 0x15f   : > { %v1903_v17 = vpop.eup %1902  ;;  %v604_v20 = vxor.u32 2147483648, %v1901_v30 }
 0x160   : > { %v601_v44 = vxor.u32 2147483648, %v1903_v17 }
 0x161   : > { %v605_v19 = vsel %vm603_vm4, %v604_v20, %v1903_v17 }
 0x162   : > { %v602_v29 = vsel %vm600_vm5, %v1901_v30, %v601_v44 }
 0x163   : > { %v606_v34 = vsel %vm599_vm6, %v602_v29, %v605_v19 }
 0x164   : > { %v607_v7 = vsel %vm596_vm7, nan, %v606_v34 }
 0x165   : > { %1783 = vmatprep.subr.mxu1 %v607_v7  ;;  %1551 = vst [vmem:[%s2457_s23] sm:$0xff] %v607_v7 }
 0x166   : > { %1784 = vmatpush3.msra.mxu1 %v607_v7 }
 0x167   : > { %1786 = vmatmul.mubr.msk.f32.vlgmr.msra.gmra.mxu1 %vm948_vm14, %v921_v60 }
 0x168   : > { %1788 = vmatprep.mubr.msk.f32.mxu1 %vm948_vm14, %v922_v2 }
 0x16b   : > { %1789 = vmatmul.mubr.msk.f32.gmra.mxu1 %vm948_vm14, %v923_v37 }
 0x227   : > { %v1787_v42 = vpop.f32.mrf.mxu1 }
 0x228   : > { %v1033_v31 = vadd.f32 %v1787_v42, %v936_v25 }
 0x229   : > { %v1027_v43 = vpop.f32.mrf.mxu1 }
 0x22a   : > { %v2483_v48 = vmul.f32 30.0, %v1033_v31  ;;  %v1028_v45 = vadd.f32 %v1027_v43, %v931_v28 }
 0x22b   : > { %v1790_v32 = vpop.f32.mrf.mxu1 }
 0x22c   : > { %v1154_v56 = vand.u32 2147483647, %v2483_v48  ;;  %v1157_v59 = vand.u32 2139095040, %v2483_v48  ;;  %v2487_v5 = vmul.f32 30.0, %v1028_v45  ;;  %v1043_v63 = vadd.f32 %v1790_v32, %v946_v15 }
 0x22d   : > { %v1037_v10 = vpop.f32.mrf.mxu1 }
 0x22e   : > { %v1158_v40 = vshrl.u32 %v1157_v59, 23  ;;  %v1161_v57 = vand.u32 8388607, %v1154_v56  ;;  %v1050_v11 = vand.u32 2147483647, %v2487_v5  ;;  %v1053_v12 = vand.u32 2139095040, %v2487_v5 }
 0x22f   : > { %v2493_v61 = vmul.f32 30.0, %v1043_v63  ;;  %v1038_v27 = vadd.f32 %v1037_v10, %v941_v41 }
 0x230   : > { %v1733_v51 = vadd.s32 4294967169, %v1158_v40  ;;  %v1057_v54 = vand.u32 8388607, %v1050_v11  ;;  %v1054_v55 = vshrl.u32 %v1053_v12, 23  ;;  %v1162_v6 = vor.u32 8388608, %v1161_v57 }
 0x231   : > { %v1365_v13 = vand.u32 2139095040, %v2493_v61  ;;  %v1362_v53 = vand.u32 2147483647, %v2493_v61  ;;  %v2499_v14 = vmul.f32 30.0, %v1038_v27 }
 0x232   : > { %v1164_v36 = vadd.s32 1, %v1733_v51  ;;  %v1729_v35 = vadd.s32 4294967169, %v1054_v55  ;;  %v1058_v46 = vor.u32 8388608, %v1057_v54  ;;  %v2501_v1 = vshll.u32 %v1162_v6, 8 }
 0x233   : > { %v1366_v16 = vshrl.u32 %v1365_v13, 23  ;;  %v2507_v52 = vand.u32 8388607, %v1362_v53  ;;  %v1258_v50 = vand.u32 2147483647, %v2499_v14 }
 0x234   : > { %vm1165_vm8 = vcmp.gt.s32.totalorder %v1164_v36, 0  ;;  %v1060_v49 = vadd.s32 1, %v1729_v35  ;;  %v2503_v8 = vshll.u32 %v1058_v46, 8 }
 0x235   : > { %v1166_v39 = vsel %vm1165_vm8, %v1164_v36, 0  ;;  %v1741_v23 = vadd.s32 4294967169, %v1366_v16 }
 0x236   : > { %v1167_v26 = vshrl.u32 %v1166_v39, 5  ;;  %v1168_v47 = vand.u32 31, %v1166_v39  ;;  %vm1061_vm9 = vcmp.gt.s32.totalorder %v1060_v49, 0 }
 0x237   : > { %v2512_v4 = vadd.s32 1, %v1741_v23  ;;  %v1062_v15 = vsel %vm1061_vm9, %v1060_v49, 0 }
 0x238   : > { %v1169_v21 = vsub.s32 32, %v1168_v47  ;;  %v1171_v9 = vshll.u32 %v1986_v22, %v1168_v47  ;;  %v1174_v33 = vshll.u32 %v1987_v24, %v1168_v47  ;;  %v1177_v18 = vshll.u32 %v1988_v38, %v1168_v47 }
 0x239   : > { %v1180_v30 = vshll.u32 %v1984_v62, %v1168_v47  ;;  %v1183_v17 = vshll.u32 %v1983_v58, %v1168_v47  ;;  %vm1186_vm10 = vcmp.lt.s32.totalorder %v1167_v26, 1  ;;  %vm1187_vm11 = vcmp.lt.s32.totalorder %v1167_v26, 2 }
 0x23a   : > { %v1172_v20 = vshrl.u32 %v1987_v24, %v1169_v21  ;;  %v1175_v44 = vshrl.u32 %v1988_v38, %v1169_v21  ;;  %v1178_v19 = vshrl.u32 %v1984_v62, %v1169_v21  ;;  %v1170_v29 = vshrl.u32 %v1986_v22, %v1169_v21 }
 0x23b   : > { %v1181_v34 = vshrl.u32 %v1983_v58, %v1169_v21  ;;  %v1184_v7 = vshrl.u32 %v1985_v0, %v1169_v21  ;;  %vm1188_vm12 = vcmp.lt.s32.totalorder %v1167_v26, 3  ;;  %vm1189_vm13 = vcmp.lt.s32.totalorder %v1167_v26, 4 }
 0x23c   : > { %v1173_v60 = vor.u32 %v1172_v20, %v1171_v9  ;;  %v1176_v2 = vor.u32 %v1175_v44, %v1174_v33  ;;  %v1179_v37 = vor.u32 %v1178_v19, %v1177_v18  ;;  %v1064_v42 = vand.u32 31, %v1062_v15 }
 0x23d   : > { %v1182_v41 = vor.u32 %v1181_v34, %v1180_v30  ;;  %v1185_v25 = vor.u32 %v1184_v7, %v1183_v17  ;;  %v1063_v27 = vshrl.u32 %v1062_v15, 5  ;;  %vm1373_vm4 = vcmp.gt.s32.totalorder %v2512_v4, 0 }
 0x23e   : > { %v1190_v31 = vsel %vm1186_vm10, %v1170_v29, %v1173_v60  ;;  %v1191_v28 = vsel %vm1189_vm13, %v1179_v37, 2102212464  ;;  %v1194_v43 = vsel %vm1186_vm10, %v1173_v60, %v1176_v2  ;;  %v1198_v45 = vsel %vm1186_vm10, %v1176_v2, %v1179_v37 }
 0x23f   : > { %v1192_v32 = vsel %vm1188_vm12, %v1176_v2, %v1191_v28  ;;  %v1195_v59 = vsel %vm1189_vm13, %v1182_v41, 920167782  ;;  %v1199_v63 = vsel %vm1189_vm13, %v1185_v25, 1326507024  ;;  %v1065_v10 = vsub.s32 32, %v1064_v42 }
 0x240   : > { %v1193_v40 = vsel %vm1187_vm11, %v1190_v31, %v1192_v32  ;;  %v1196_v57 = vsel %vm1188_vm12, %v1179_v37, %v1195_v59  ;;  %v1200_v12 = vsel %vm1188_vm12, %v1182_v41, %v1199_v63  ;;  %v1067_v13 = vshll.u32 %v1986_v22, %v1064_v42 }
 0x241   : > { %v1197_v51 = vsel %vm1187_vm11, %v1194_v43, %v1196_v57  ;;  %v1201_v54 = vsel %vm1187_vm11, %v1198_v45, %v1200_v12  ;;  %v1209_v55 = vmul.u32 %v2501_v1, %v1193_v40  ;;  %v1066_v16 = vshrl.u32 %v1986_v22, %v1065_v10 }
 0x242   : > { %v2536_v6 = vmul.u32.u64.low %v2501_v1, %v1201_v54  ;;  %v2537_v36 = vmul.u32.u64.high %v2501_v1, %v1201_v54, %v2536_v6  ;;  %v2540_v35 = vmul.u32.u64.low %v2501_v1, %v1197_v51  ;;  %v2541_v46 = vmul.u32.u64.high %v2501_v1, %v1197_v51, %v2540_v35 }
 0x243   : > { %v1068_v39 = vshrl.u32 %v1987_v24, %v1065_v10  ;;  %v1070_v49 = vshll.u32 %v1987_v24, %v1064_v42  ;;  %v1071_v23 = vshrl.u32 %v1988_v38, %v1065_v10  ;;  %v1073_v26 = vshll.u32 %v1988_v38, %v1064_v42 }
 0x244   : > { %v1074_v47 = vshrl.u32 %v1984_v62, %v1065_v10  ;;  %v1076_v21 = vshll.u32 %v1984_v62, %v1064_v42  ;;  %v1077_v9 = vshrl.u32 %v1983_v58, %v1065_v10  ;;  %v1079_v18 = vshll.u32 %v1983_v58, %v1064_v42 }
 0x245   : > { %v1069_v33 = vor.u32 %v1068_v39, %v1067_v13  ;;  %v1072_v1 = vor.u32 %v1071_v23, %v1070_v49  ;;  %v1080_v30 = vshrl.u32 %v1985_v0, %v1065_v10  ;;  %vm1211_vm15 = vc.u32 %v2537_v36, %v2540_v35 }
 0x246   : > { %v1212_v17 = vadd.s32 1, %v2541_v46  ;;  %v1075_v20 = vor.u32 %v1074_v47, %v1073_v26  ;;  %vm1082_vm0 = vcmp.lt.s32.totalorder %v1063_v27, 1  ;;  %v1078_v44 = vor.u32 %v1077_v9, %v1076_v21 }
 0x247   : > { %v1081_v19 = vor.u32 %v1080_v30, %v1079_v18  ;;  %vm1083_vm1 = vcmp.lt.s32.totalorder %v1063_v27, 2  ;;  %vm1084_vm2 = vcmp.lt.s32.totalorder %v1063_v27, 3  ;;  %vm1085_vm3 = vcmp.lt.s32.totalorder %v1063_v27, 4 }
 0x248   : > { %v1213_v29 = vsel %vm1211_vm15, %v1212_v17, %v2541_v46  ;;  %v1086_v34 = vsel %vm1082_vm0, %v1066_v16, %v1069_v33  ;;  %v1090_v7 = vsel %vm1082_vm0, %v1069_v33, %v1072_v1  ;;  %v1087_v2 = vsel %vm1085_vm3, %v1075_v20, 2102212464 }
 0x249   : > { %v1214_v60 = vadd.s32 %v1213_v29, %v1209_v55  ;;  %v1091_v37 = vsel %vm1085_vm3, %v1078_v44, 920167782  ;;  %v1094_v15 = vsel %vm1082_vm0, %v1072_v1, %v1075_v20  ;;  %v1088_v41 = vsel %vm1084_vm2, %v1072_v1, %v1087_v2 }
 0x24a   : > { %v1092_v25 = vsel %vm1084_vm2, %v1075_v20, %v1091_v37  ;;  %v1095_v42 = vsel %vm1085_vm3, %v1081_v19, 1326507024  ;;  %v1370_v45 = vor.u32 8388608, %v2507_v52  ;;  %v1089_v32 = vsel %vm1083_vm1, %v1086_v34, %v1088_v41 }
 0x24b   : > { %v1215_v31 = vadd.s32 536870912, %v1214_v60  ;;  %v1093_v28 = vsel %vm1083_vm1, %v1090_v7, %v1092_v25  ;;  %v1096_v43 = vsel %vm1084_vm2, %v1078_v44, %v1095_v42  ;;  %v1374_v51 = vsel %vm1373_vm4, %v2512_v4, 0 }
 0x24c   : > { %v1097_v59 = vsel %vm1083_vm1, %v1094_v15, %v1096_v43  ;;  %v2564_v63 = vmul.u32.u64.low %v2503_v8, %v1093_v28  ;;  %v2565_v10 = vmul.u32.u64.high %v2503_v8, %v1093_v28, %v2564_v63  ;;  %v1376_v54 = vand.u32 31, %v1374_v51 }
 0x24d   : > { %v2568_v40 = vshrl.u32 %v1215_v31, 30  ;;  %v2571_v57 = vmul.u32.u64.low %v2503_v8, %v1097_v59  ;;  %v2572_v12 = vmul.u32.u64.high %v2503_v8, %v1097_v59, %v2571_v57  ;;  %v2576_v55 = vshll.u32 %v1370_v45, 8 }
 0x24e   : > { %v1261_v27 = vand.u32 2139095040, %v2499_v14  ;;  %v2581_v13 = vand.u32 8388607, %v1258_v50  ;;  %v1105_v6 = vmul.u32 %v2503_v8, %v1089_v32  ;;  %v1108_v46 = vadd.s32 1, %v2565_v10 }
 0x24f   : > { %v1217_v52 = vshll.u32 %v2568_v40, 30  ;;  %v1375_v16 = vshrl.u32 %v1374_v51, 5  ;;  %v1377_v39 = vsub.s32 32, %v1376_v54  ;;  %vm1107_vm5 = vc.u32 %v2572_v12, %v2564_v63 }
 0x250   : > { %v1379_v4 = vshll.u32 %v1986_v22, %v1376_v54  ;;  %v1382_v23 = vshll.u32 %v1987_v24, %v1376_v54  ;;  %v1109_v26 = vsel %vm1107_vm5, %v1108_v46, %v2565_v10  ;;  %v1385_v8 = vshll.u32 %v1988_v38, %v1376_v54 }
 0x251   : > { %v2585_v49 = vsub.s32 %v1214_v60, %v1217_v52  ;;  %v1380_v47 = vshrl.u32 %v1987_v24, %v1377_v39  ;;  %v1383_v21 = vshrl.u32 %v1988_v38, %v1377_v39  ;;  %v1110_v33 = vadd.s32 %v1109_v26, %v1105_v6 }
 0x252   : > { %v1386_v1 = vshrl.u32 %v1984_v62, %v1377_v39  ;;  %v1388_v18 = vshll.u32 %v1984_v62, %v1376_v54  ;;  %v1389_v20 = vshrl.u32 %v1983_v58, %v1377_v39  ;;  %v1391_v44 = vshll.u32 %v1983_v58, %v1376_v54 }
 0x253   : > { %v1220_v9 = vsub.s32 0, %v2585_v49  ;;  %v1381_v30 = vor.u32 %v1380_v47, %v1379_v4  ;;  %v1384_v17 = vor.u32 %v1383_v21, %v1382_v23  ;;  %v1111_v29 = vadd.s32 536870912, %v1110_v33 }
 0x254   : > { %v1387_v34 = vor.u32 %v1386_v1, %v1385_v8  ;;  %v1392_v7 = vshrl.u32 %v1985_v0, %v1377_v39  ;;  %v1378_v60 = vshrl.u32 %v1986_v22, %v1377_v39  ;;  %v1390_v2 = vor.u32 %v1389_v20, %v1388_v18 }
 0x255   : > { %v1734_v19 = vmin.u32 %v1220_v9, %v2585_v49  ;;  %vm1394_vm6 = vcmp.lt.s32.totalorder %v1375_v16, 1  ;;  %v1262_v37 = vshrl.u32 %v1261_v27, 23  ;;  %v2603_v41 = vshrl.u32 %v1111_v29, 30 }
 0x256   : > { %v1393_v25 = vor.u32 %v1392_v7, %v1391_v44  ;;  %vm1397_vm7 = vcmp.lt.s32.totalorder %v1375_v16, 4  ;;  %vm1396_vm8 = vcmp.lt.s32.totalorder %v1375_v16, 3  ;;  %v1402_v31 = vsel %vm1394_vm6, %v1381_v30, %v1384_v17 }
 0x257   : > { %v1222_v15 = vclz %v1734_v19  ;;  %v1399_v42 = vsel %vm1397_vm7, %v1387_v34, 2102212464  ;;  %v1403_v28 = vsel %vm1397_vm7, %v1390_v2, 920167782  ;;  %v1113_v45 = vshll.u32 %v2603_v41, 30 }
 0x258   : > { %vm1395_vm9 = vcmp.lt.s32.totalorder %v1375_v16, 2  ;;  %v1404_v32 = vsel %vm1396_vm8, %v1387_v34, %v1403_v28  ;;  %v1398_v59 = vsel %vm1394_vm6, %v1378_v60, %v1381_v30  ;;  %v1406_v57 = vsel %vm1394_vm6, %v1384_v17, %v1387_v34 }
 0x259   : > { %v1735_v43 = vadd.s32 4294967294, %v1222_v15  ;;  %v1405_v10 = vsel %vm1395_vm9, %v1402_v31, %v1404_v32  ;;  %v1407_v51 = vsel %vm1397_vm7, %v1393_v25, 1326507024  ;;  %v1114_v54 = vsub.s32 %v1110_v33, %v1113_v45 }
 0x25a   : > { %v1400_v52 = vsel %vm1396_vm8, %v1384_v17, %v1399_v42  ;;  %v1408_v27 = vsel %vm1396_vm8, %v1390_v2, %v1407_v51  ;;  %v2612_v39 = vmul.u32.u64.low %v2576_v55, %v1405_v10  ;;  %v2613_v4 = vmul.u32.u64.high %v2576_v55, %v1405_v10, %v2612_v39 }
 0x25b   : > { %vm1736_vm10 = vcmp.lt.s32.totalorder %v1735_v43, 0  ;;  %v1409_v46 = vsel %vm1395_vm9, %v1406_v57, %v1408_v27  ;;  %v1210_v23 = vadd.s32 %v2540_v35, %v2537_v36  ;;  %v1116_v21 = vsub.s32 0, %v1114_v54 }
 0x25c   : > { %v1225_v6 = vsel %vm1736_vm10, 0, %v1735_v43  ;;  %v1401_v8 = vsel %vm1395_vm9, %v1398_v59, %v1400_v52  ;;  %v2620_v9 = vmul.u32.u64.low %v2576_v55, %v1409_v46  ;;  %v2621_v33 = vmul.u32.u64.high %v2576_v55, %v1409_v46, %v2620_v9 }
 0x25d   : > { %v1226_v26 = vsub.s32 32, %v1225_v6  ;;  %v1230_v47 = vsub.s32 4294967266, %v1225_v6  ;;  %v1737_v1 = vadd.s32 4294967169, %v1262_v37  ;;  %v1227_v18 = vshll.u32 %v2585_v49, %v1225_v6 }
 0x25e   : > { %v1730_v20 = vmin.u32 %v1116_v21, %v1114_v54  ;;  %v1420_v44 = vadd.s32 1, %v2613_v4  ;;  %v1417_v34 = vmul.u32 %v2576_v55, %v1401_v8  ;;  %vm1419_vm11 = vc.u32 %v2621_v33, %v2612_v39 }
 0x25f   : > { %v1228_v30 = vshrl.u32 %v1210_v23, %v1226_v26  ;;  %v1231_v17 = vadd.s32 127, %v1230_v47  ;;  %v1268_v19 = vadd.s32 1, %v1737_v1  ;;  %v1266_v16 = vor.u32 8388608, %v2581_v13 }
 0x260   : > { %v1118_v35 = vclz %v1730_v20  ;;  %v1421_v49 = vsel %vm1419_vm11, %v1420_v44, %v2613_v4  ;;  %v1240_v15 = vsub.s32 4, %v2568_v40  ;;  %v1106_v55 = vadd.s32 %v2564_v63, %v2572_v12 }
 0x261   : > { %v1229_v29 = vor.u32 %v1228_v30, %v1227_v18  ;;  %v1232_v36 = vshll.u32 %v1231_v17, 23  ;;  %vm1269_vm12 = vcmp.gt.s32.totalorder %v1268_v19, 0  ;;  %v1422_v2 = vadd.s32 %v1421_v49, %v1417_v34 }
 0x262   : > { %v1731_v60 = vadd.s32 4294967294, %v1118_v35  ;;  %v1270_v37 = vsel %vm1269_vm12, %v1268_v19, 0  ;;  %v2633_v45 = vshll.u32 %v1266_v16, 8  ;;  %vm1156_vm15 = vcmp.lt.s32.totalorder %v2483_v48, 0 }
 0x263   : > { %v1233_v7 = vor.u32 4788187, %v1232_v36  ;;  %v1236_v42 = vcvt.s32.f32 %v1229_v29  ;;  %v1272_v31 = vand.u32 31, %v1270_v37  ;;  %v1423_v43 = vadd.s32 536870912, %v1422_v2 }
 0x264   : > { %vm1732_vm13 = vcmp.lt.s32.totalorder %v1731_v60, 0  ;;  %v1271_v10 = vshrl.u32 %v1270_v37, 5  ;;  %vm1052_vm0 = vcmp.lt.s32.totalorder %v2487_v5, 0  ;;  %vm2653_vm1 = vcmp.le.f32.partialorder %v1154_v56, 0.7853982 }
 0x265   : > { %v1234_v25 = vand.u32 2147483647, %v1233_v7  ;;  %v1121_v28 = vsel %vm1732_vm13, 0, %v1731_v60  ;;  %v2635_v51 = vshrl.u32 %v1423_v43, 30  ;;  %v1273_v52 = vsub.s32 32, %v1272_v31 }
 0x266   : > { %v1122_v32 = vsub.s32 32, %v1121_v28  ;;  %v1126_v59 = vsub.s32 4294967266, %v1121_v28  ;;  %v1123_v57 = vshll.u32 %v1114_v54, %v1121_v28  ;;  %v1275_v27 = vshll.u32 %v1986_v22, %v1272_v31 }
 0x267   : > { %v1237_v13 = vmul.f32 %v1236_v42, %v1234_v25  ;;  %v1278_v23 = vshll.u32 %v1987_v24, %v1272_v31  ;;  %v1425_v63 = vshll.u32 %v2635_v51, 30  ;;  %v1276_v12 = vshrl.u32 %v1987_v24, %v1273_v52 }
 0x268   : > { %v1124_v46 = vshrl.u32 %v1106_v55, %v1122_v32  ;;  %v1127_v4 = vadd.s32 127, %v1126_v59  ;;  %v1279_v26 = vshrl.u32 %v1988_v38, %v1273_v52  ;;  %v1281_v54 = vshll.u32 %v1988_v38, %v1272_v31 }
 0x269   : > { %v1238_v6 = vxor.u32 2147483648, %v1237_v13  ;;  %v1274_v8 = vshrl.u32 %v1986_v22, %v1273_v52  ;;  %v1282_v9 = vshrl.u32 %v1984_v62, %v1273_v52  ;;  %v2647_v1 = vsub.s32 %v1422_v2, %v1425_v63 }
 0x26a   : > { %v1125_v47 = vor.u32 %v1124_v46, %v1123_v57  ;;  %v1128_v21 = vshll.u32 %v1127_v4, 23  ;;  %v1277_v18 = vor.u32 %v1276_v12, %v1275_v27  ;;  %v1280_v30 = vor.u32 %v1279_v26, %v1278_v23 }
 0x26b   : > { %v1284_v17 = vshll.u32 %v1984_v62, %v1272_v31  ;;  %v1283_v44 = vor.u32 %v1282_v9, %v1281_v54  ;;  %v1285_v19 = vshrl.u32 %v1983_v58, %v1273_v52  ;;  %v1428_v22 = vsub.s32 0, %v2647_v1 }
 0x26c   : > { %v1129_v20 = vor.u32 4788187, %v1128_v21  ;;  %v1132_v24 = vcvt.s32.f32 %v1125_v47  ;;  %v1287_v29 = vshll.u32 %v1983_v58, %v1272_v31  ;;  %v1288_v36 = vshrl.u32 %v1985_v0, %v1273_v52 }
 0x26d   : > { %vm1290_vm2 = vcmp.lt.s32.totalorder %v1271_v10, 1  ;;  %v1286_v62 = vor.u32 %v1285_v19, %v1284_v17  ;;  %vm1291_vm3 = vcmp.lt.s32.totalorder %v1271_v10, 2  ;;  %vm1292_vm4 = vcmp.lt.s32.totalorder %v1271_v10, 3 }
 0x26e   : > { %v1130_v35 = vand.u32 2147483647, %v1129_v20  ;;  %v1742_v34 = vmin.u32 %v1428_v22, %v2647_v1  ;;  %v1289_v16 = vor.u32 %v1288_v36, %v1287_v29  ;;  %vm1293_vm5 = vcmp.lt.s32.totalorder %v1271_v10, 4 }
 0x26f   : > { %v1294_v56 = vsel %vm1290_vm2, %v1274_v8, %v1277_v18  ;;  %v1295_v60 = vsel %vm1293_vm5, %v1283_v44, 2102212464  ;;  %v1298_v49 = vsel %vm1290_vm2, %v1277_v18, %v1280_v30  ;;  %v1299_v2 = vsel %vm1293_vm5, %v1286_v62, 920167782 }
 0x270   : > { %v1133_v7 = vmul.f32 %v1132_v24, %v1130_v35  ;;  %v1430_v37 = vclz %v1742_v34  ;;  %v1296_v58 = vsel %vm1292_vm4, %v1280_v30, %v1295_v60  ;;  %v1300_v0 = vsel %vm1292_vm4, %v1283_v44, %v1299_v2 }
 0x271   : > { %v1302_v25 = vsel %vm1290_vm2, %v1280_v30, %v1283_v44  ;;  %v1239_v42 = vsel %vm1156_vm15, %v1238_v6, %v1237_v13  ;;  %v1301_v55 = vsel %vm1291_vm3, %v1298_v49, %v1300_v0  ;;  %v1303_v28 = vsel %vm1293_vm5, %v1289_v16, 1326507024 }
 0x272   : > { %v1134_v31 = vxor.u32 2147483648, %v1133_v7  ;;  %v1743_v43 = vadd.s32 4294967294, %v1430_v37  ;;  %v1304_v32 = vsel %vm1292_vm4, %v1286_v62, %v1303_v28  ;;  %v1297_v27 = vsel %vm1291_vm3, %v1294_v56, %v1296_v58 }
 0x273   : > { %v2671_v59 = vmul.u32.u64.low %v2633_v45, %v1301_v55  ;;  %v2672_v57 = vmul.u32.u64.high %v2633_v45, %v1301_v55, %v2671_v59  ;;  %v1305_v46 = vsel %vm1291_vm3, %v1302_v25, %v1304_v32  ;;  %vm2681_vm6 = vcmp.le.f32.partialorder %v1050_v11, 0.7853982 }
 0x274   : > { %v1135_v52 = vsel %vm1052_vm0, %v1134_v31, %v1133_v7  ;;  %vm1744_vm7 = vcmp.lt.s32.totalorder %v1743_v43, 0  ;;  %v2686_v6 = vmul.u32.u64.low %v2633_v45, %v1305_v46  ;;  %v2687_v4 = vmul.u32.u64.high %v2633_v45, %v1305_v46, %v2686_v6 }
 0x275   : > { %v1242_v23 = vsel %vm2653_vm1, %v2483_v48, %v1239_v42  ;;  %v1433_v63 = vsel %vm1744_vm7, 0, %v1743_v43  ;;  %v1241_v10 = vsel %vm1156_vm15, %v1240_v15, %v2568_v40  ;;  %v1136_v11 = vsub.s32 4, %v2603_v41 }
 0x276   : > { %1904 = vcosq.f32 %v1242_v23  ;;  %v1418_v12 = vadd.s32 %v2612_v39, %v2621_v33  ;;  %v1434_v26 = vsub.s32 32, %v1433_v63  ;;  %v1438_v54 = vsub.s32 4294967266, %v1433_v63 }
 0x277   : > { %v1316_v47 = vadd.s32 1, %v2672_v57  ;;  %v1313_v21 = vmul.u32 %v2633_v45, %v1297_v27  ;;  %1906 = vsinq.f32 %v1242_v23  ;;  %v1138_v8 = vsel %vm2681_vm6, %v2487_v5, %v1135_v52 }
 0x278   : > { %v1435_v9 = vshll.u32 %v2647_v1, %v1433_v63  ;;  %v1436_v40 = vshrl.u32 %v1418_v12, %v1434_v26  ;;  %v1439_v15 = vadd.s32 127, %v1438_v54  ;;  %vm1315_vm8 = vc.u32 %v2687_v4, %v2671_v59 }
 0x279   : > { %v1317_v39 = vsel %vm1315_vm8, %v1316_v47, %v2672_v57  ;;  %v1243_v33 = vsel %vm2653_vm1, 0, %v1241_v10  ;;  %v1137_v45 = vsel %vm1052_vm0, %v1136_v11, %v2603_v41  ;;  %1908 = vcosq.f32 %v1138_v8 }
 0x27a   : > { %v1437_v18 = vor.u32 %v1436_v40, %v1435_v9  ;;  %v1440_v30 = vshll.u32 %v1439_v15, 23  ;;  %v1318_v17 = vadd.s32 %v1317_v39, %v1313_v21  ;;  %1910 = vsinq.f32 %v1138_v8 }
 0x27b   : > { %vm1990_vm9 = vmmov 0   ;;  %v1247_v24 = vadd.s32 3, %v1243_v33  ;;  %v1139_v44 = vsel %vm2681_vm6, 0, %v1137_v45  ;;  %vm1364_vm10 = vcmp.lt.s32.totalorder %v2493_v61, 0 }
 0x27c   : > { %v1441_v1 = vor.u32 4788187, %v1440_v30  ;;  %v1319_v20 = vadd.s32 536870912, %v1318_v17  ;;  %1799 = vmatprep.mubr.msk.f32.mxu0 %vm1990_vm9, %v1989_v3  ;;  %v1444_v38 = vcvt.s32.f32 %v1437_v18  ;;  %v1143_v36 = vadd.s32 3, %v1139_v44 }
 0x27d   : > { %v1248_v35 = vand.u32 3, %v1247_v24  ;;  %v1448_v56 = vsub.s32 4, %v2635_v51  ;;  %vm2726_vm11 = vcmp.le.f32.partialorder %v1362_v53, 0.7853982  ;;  %vm1246_vm1 = vweird.f32 %v2483_v48 }
 0x27e   : > { %v1442_v19 = vand.u32 2147483647, %v1441_v1  ;;  %v2717_v22 = vshrl.u32 %v1319_v20, 30  ;;  %v1144_v58 = vand.u32 3, %v1143_v36  ;;  %vm1142_vm5 = vweird.f32 %v2487_v5 }
 0x27f   : > { %vm1253_vm12 = vcmp.eq.s32.totalorder %v1248_v35, 2  ;;  %vm1250_vm13 = vcmp.eq.s32.totalorder %v1248_v35, 0  ;;  %v1449_v53 = vsel %vm1364_vm10, %v1448_v56, %v2635_v51  ;;  %vm1249_vm15 = vcmp.lt.s32.totalorder %v1248_v35, 2 }
 0x280   : > { %v1445_v29 = vmul.f32 %v1444_v38, %v1442_v19  ;;  %v1321_v41 = vshll.u32 %v2717_v22, 30  ;;  %vm1149_vm0 = vcmp.eq.s32.totalorder %v1144_v58, 2  ;;  %v1451_v6 = vsel %vm2726_vm11, 0, %v1449_v53 }
 0x281   : > { %vm1146_vm2 = vcmp.eq.s32.totalorder %v1144_v58, 0  ;;  %vm1145_vm3 = vcmp.lt.s32.totalorder %v1144_v58, 2  ;;  %v1455_v10 = vadd.s32 3, %v1451_v6  ;;  %v1314_v12 = vadd.s32 %v2671_v59, %v2687_v4  ;;  %v1471_v58 = vpop.permute.xlu0 %1470 }
 0x282   : > { %v1446_v34 = vxor.u32 2147483648, %v1445_v29  ;;  %v1322_v16 = vsub.s32 %v1318_v17, %v1321_v41  ;;  %vm1454_vm9 = vweird.f32 %v2493_v61  ;;  %v1344_v19 = vsub.s32 4, %v2717_v22 }
 0x283   : > { %v1905_v62 = vpop.eup %1904  ;;  %v1456_v9 = vand.u32 3, %v1455_v10 }
 0x284   : > { %v1254_v7 = vxor.u32 2147483648, %v1905_v62  ;;  %v1907_v60 = vpop.eup %1906  ;;  %v1447_v49 = vsel %vm1364_vm10, %v1446_v34, %v1445_v29  ;;  %v1324_v2 = vsub.s32 0, %v1322_v16  ;;  %vm1260_vm10 = vcmp.lt.s32.totalorder %v2499_v14, 0 }
 0x285   : > { %v1450_v0 = vsel %vm2726_vm11, %v2493_v61, %v1447_v49  ;;  %v1251_v25 = vxor.u32 2147483648, %v1907_v60  ;;  %vm1461_vm6 = vcmp.eq.s32.totalorder %v1456_v9, 2  ;;  %vm1458_vm7 = vcmp.eq.s32.totalorder %v1456_v9, 0 }
 0x286   : > { %v1909_v42 = vpop.eup %1908  ;;  %v1738_v31 = vmin.u32 %v1324_v2, %v1322_v16  ;;  %1912 = vcosq.f32 %v1450_v0  ;;  %v1255_v55 = vsel %vm1253_vm12, %v1254_v7, %v1907_v60  ;;  %vm1457_vm8 = vcmp.lt.s32.totalorder %v1456_v9, 2 }
 0x287   : > { %v1911_v28 = vpop.eup %1910  ;;  %1914 = vsinq.f32 %v1450_v0  ;;  %v1252_v43 = vsel %vm1250_vm13, %v1905_v62, %v1251_v25  ;;  %v1150_v32 = vxor.u32 2147483648, %v1909_v42  ;;  %vm1259_vm11 = vcmp.le.f32.partialorder %v1258_v50, 0.7853982 }
 0x288   : > { %v1326_v57 = vclz %v1738_v31  ;;  %v1256_v52 = vsel %vm1249_vm15, %v1252_v43, %v1255_v55  ;;  %v1147_v27 = vxor.u32 2147483648, %v1911_v28  ;;  %v1345_v61 = vsel %vm1260_vm10, %v1344_v19, %v2717_v22  ;;  %v1466_v22 = vld [vmem:[%s365_s9] sm:$0x1] }
 0x289   : > { %v1151_v46 = vsel %vm1149_vm0, %v1150_v32, %v1911_v28  ;;  %v2739_v23 = vsel %vm1246_vm1, nan, %v1256_v52  ;;  %v1347_v41 = vsel %vm1259_vm11, 0, %v1345_v61  ;;  %vm1350_vm0 = vweird.f32 %v2499_v14 }
 0x28a   : > { %v1739_v13 = vadd.s32 4294967294, %v1326_v57  ;;  %1556 = vst [vmem:[%s2457_s23 + $0x28] sm:$0xff] %v2739_v23  ;;  %v1148_v51 = vsel %vm1146_vm2, %v1909_v42, %v1147_v27  ;;  %v1351_v36 = vadd.s32 3, %v1347_v41  ;;  %vm1559_vm1 = vcmask 1040384  }
 0x28b   : > { %v1152_v63 = vsel %vm1145_vm3, %v1148_v51, %v1151_v46 }
 0x28c   : > { %vm1740_vm4 = vcmp.lt.s32.totalorder %v1739_v13, 0  ;;  %v1153_v11 = vsel %vm1142_vm5, nan, %v1152_v63  ;;  %v1352_v35 = vand.u32 3, %v1351_v36 }
 0x28d   : > { %v1329_v48 = vsel %vm1740_vm4, 0, %v1739_v13  ;;  %1555 = vst [vmem:[%s2457_s23 + $0x20] sm:$0xff] %v1153_v11 }
 0x28e   : > { %v1330_v26 = vsub.s32 32, %v1329_v48  ;;  %v1334_v54 = vsub.s32 4294967266, %v1329_v48  ;;  %v1331_v47 = vshll.u32 %v1322_v16, %v1329_v48  ;;  %vm1357_vm12 = vcmp.eq.s32.totalorder %v1352_v35, 2 }
 0x28f   : > { %vm1354_vm13 = vcmp.eq.s32.totalorder %v1352_v35, 0  ;;  %vm1353_vm15 = vcmp.lt.s32.totalorder %v1352_v35, 2 }
 0x290   : > { %v1332_v21 = vshrl.u32 %v1314_v12, %v1330_v26  ;;  %v1335_v8 = vadd.s32 127, %v1334_v54 }
 0x292   : > { %v1333_v40 = vor.u32 %v1332_v21, %v1331_v47  ;;  %v1336_v15 = vshll.u32 %v1335_v8, 23 }
 0x293   : > { %v1913_v39 = vpop.eup %1912 }
 0x294   : > { %v1915_v33 = vpop.eup %1914  ;;  %v1337_v45 = vor.u32 4788187, %v1336_v15  ;;  %v1462_v5 = vxor.u32 2147483648, %v1913_v39  ;;  %v1340_v17 = vcvt.s32.f32 %v1333_v40 }
 0x295   : > { %v1459_v18 = vxor.u32 2147483648, %v1915_v33 }
 0x296   : > { %v1338_v30 = vand.u32 2147483647, %v1337_v45  ;;  %v1463_v59 = vsel %vm1461_vm6, %v1462_v5, %v1915_v33 }
 0x297   : > { %v1460_v4 = vsel %vm1458_vm7, %v1913_v39, %v1459_v18 }
 0x298   : > { %v1341_v1 = vmul.f32 %v1340_v17, %v1338_v30  ;;  %v1464_v20 = vsel %vm1457_vm8, %v1460_v4, %v1463_v59 }
 0x299   : > { %v1465_v24 = vsel %vm1454_vm9, nan, %v1464_v20 }
 0x29a   : > { %v1342_v44 = vxor.u32 2147483648, %v1341_v1  ;;  %1792 = vmatpush3.msra.mxu0 %v1465_v24  ;;  %1558 = vst [vmem:[%s2457_s23 + $0x38] sm:$0xff] %v1465_v24 }
 0x29b   : > { %1793 = vmatprep.subr.mxu0 %v1989_v3 }
 0x29c   : > { %v1343_v38 = vsel %vm1260_vm10, %v1342_v44, %v1341_v1 }
 0x29d   : > { %v1346_v29 = vsel %vm1259_vm11, %v2499_v14, %v1343_v38  ;;  %v1473_v14 = vlaneseq }
 0x29e   : > { %1916 = vcosq.f32 %v1346_v29 }
 0x29f   : > { %1918 = vsinq.f32 %v1346_v29  ;;  %v1474_v2 = vshrl.u32 %v1473_v14, 7 }
 0x2a1   : > { %v1475_v37 = vsub.s32 0, %v1474_v2 }
 0x2a3   : > { %v1476_v0 = vrot.slane %v1471_v58, %v1475_v37 }
 0x2ab   : > { %v1917_v62 = vpop.eup %1916 }
 0x2ac   : > { %v1919_v34 = vpop.eup %1918  ;;  %v1358_v16 = vxor.u32 2147483648, %v1917_v62 }
 0x2ad   : > { %v1355_v56 = vxor.u32 2147483648, %v1919_v34 }
 0x2ae   : > { %v1359_v7 = vsel %vm1357_vm12, %v1358_v16, %v1919_v34 }
 0x2af   : > { %v1356_v50 = vsel %vm1354_vm13, %v1917_v62, %v1355_v56 }
 0x2b0   : > { %v1360_v60 = vsel %vm1353_vm15, %v1356_v50, %v1359_v7 }
 0x2b1   : > { %v1361_v49 = vsel %vm1350_vm0, nan, %v1360_v60 }
 0x2b2   : > { %1794 = vmatpush3.msra.mxu0 %v1361_v49  ;;  %1557 = vst [vmem:[%s2457_s23 + $0x30] sm:$0xff] %v1361_v49 }
 0x2b3   : > { %1795 = vmatprep.subr.mxu0 %v1989_v3 }
 0x2b4   : > { %1796 = vmatpush3.msra.mxu0 %v2739_v23 }
 0x2b5   : > { %1797 = vmatprep.subr.mxu0 %v1989_v3 }
 0x2b6   : > { %1798 = vmatpush3.msra.mxu0 %v1153_v11 }
 0x2b7   : > { %1800 = vmatmul.mubr.msk.f32.vlgmr.msra.gmra.mxu0 %vm948_vm14, %v1466_v22 }
 0x377   : > { %v1546_v25 = vpop.f32.mrf.mxu0 }
 0x378   : > { %v1547_v42 = vadd.f32 %v1546_v25, %v1476_v0 }
 0x379   : > { %v1801_v31 = vpop.f32.mrf.mxu0 }
 0x37a   : > { %v1550_v55 = vadd.f32 0.5, %v1547_v42 }
 0x37c   : > { %v1560_v3 = vsel %vm1559_vm1, %v1550_v55, 0.0 }
 0x37d   : > { %1561 = vst [vmem:[%s2457_s23 + $0x40] sm:$0xff] %v1560_v3 }
 0x37e   : > { %1933 = shalt.err (!%p1930_p4)
}
 0x37f   : > { %s1934_s21 = scalar_lea.hbm %s2773_s17, 1152  ;;  %s1938_s8 = scalar_lea.hbm %s2825_s7, 2304 }
 0x380   : > { %p1935_p7 = scmp.ne.s32.totalorder %s2773_s17, %s1934_s21  ;;  %p1939_p10 = scmp.lt.s32.totalorder %s2773_s17, %s2825_s7 }
 0x381   : > { %p1940_p11 = scmp.lt.s32.totalorder %s1938_s8, %s1934_s21 }
 0x382   : > { %p1936_p8 = pnand %p1935_p7, %p2072_p5 }
 0x383   : > { %p1941_p12 = por %p1940_p11, %p1939_p10 }
 0x384   : > { %p1937_p9 = pneg %p1936_p8 }
 0x386   : > { %p1942_p13 = pnand %p1941_p12, %p1937_p9 }
 0x388   : > { %1945 = shalt.err (!%p1942_p13)
}
 0x389   : > { %s1992_s14 = smov 128   ;;  %s1993_s15 = smov 8  }
 0x38a   : > { %1836 = dma.vmem_to_hbm [thread:$0]  (%p2072_p5), %s2768_s13, 1152, %s2773_s17, %s2778_s18, %s1992_s14, %s1992_s14, %s1993_s15  }
 0x38b PF: > { %p1842_p0 = scmp.ge.s32.totalorder %s1980_s27, 2  ;;  %s1591_s28 = sand.u32 1, %s1968_s24  }
 0x38c   : > { %s1592_s19 = scalar_lea.sflag [#allocation3], %s1591_s28 }
 0x38d   : > { %p1839_p1 = pnand %p1842_p0, %p2076_p6 }
 0x38f   : > { %p1840_p2 = pneg %p1839_p1 }
 0x391   : > { %1963 = dma.done.wait (%p1840_p2), %s1592_s19, 1152  }
 0x392   : > { %1965 = vsyncadd (%p1840_p2), %s1592_s19, 4294966144  ;;  %p17_p3 = scmp.ge.s32.totalorder %s2059_s30, 4   ;;  %s2840_s24 = smov %s1972_s25 }
 0x393   : > { %s2841_s25 = smov %s1976_s26  ;;  %s2842_s26 = smov %s2070_s10 }
 0x394   : > { %s2843_s27 = smov %s2059_s30  ;;  %19 = sbr.rel (!%p17_p3) target bundleno = 3 (0x3), region = 98 }
 0x399   :  { %1597 = vsyncpa [#allocation3], 1 }
 0x39a   :  { %1599 = vsyncpa [#allocation3 + $0x1], 1 }

</bundles_post_ra>
